<compile_context>
chip_gen: v5e
topology: v5e:2x2
jax: 0.10.0
libtpu: 0.0.40
codegen_flags: <defaults>
</compile_context>

<pallas_src>
import math
import functools

import jax
import jax.numpy as jnp
from jax.experimental import pallas as pl
from jax.experimental.pallas import tpu as pltpu

ALPHA = 0.01               # appnp.alpha
K_PROP = 10                # appnp.K
HID = 128                  # nn.Linear(in_feats, 128)
LANE = 128                 # TPU lane width: pad feature dims to a multiple of this
DROP_SCALE = 1.0 / 1.0001  # SparseDropout(dprob=0): mask keeps all edges, values * 1/(1.0001-0)


def _pad_to(a, target, axis):
    pad = target - a.shape[axis]
    if pad <= 0:
        return a
    widths = [(0, 0)] * a.ndim
    widths[axis] = (0, pad)
    return jnp.pad(a, widths)


def appnp_kernel(x_ref, adj_ref, w1_ref, b1_ref, w2_ref, b2_ref, o_ref):
    # x_ref:  (1, N, IN_PAD)  bf16     adj_ref: (1, N, N)     bf16
    # w1_ref: (IN_PAD, HID)   bf16     b1_ref:  (1, HID)      f32
    # w2_ref: (HID, OUT_PAD)  bf16     b2_ref:  (1, OUT_PAD)  f32
    # o_ref:  (1, N, OUT_PAD) f32
    x = x_ref[0]
    adj = adj_ref[0]

    # ---- layer 1: relu(x @ W1^T + b1)   (bf16 operands, f32 MXU accumulation) ----
    h = jnp.dot(x, w1_ref[...], preferred_element_type=jnp.float32) + b1_ref[...]
    h = jnp.maximum(h, 0.0)

    # ---- layer 2: z0 = h @ W2^T + b2 ----
    z = jnp.dot(h.astype(jnp.bfloat16), w2_ref[...],
                preferred_element_type=jnp.float32) + b2_ref[...]

    # TODO(synk): F.dropout / SparseDropout stochastic masking for dropout > 0 (training mode)
    # is not implemented; the module's default dropout=0 path is computed here (including the
    # SparseDropout 1/1.0001 value rescale, folded into the propagation coefficient below).

    # ---- K propagation steps:  z <- (1-alpha) * ((adj / 1.0001) @ z) + alpha * z ----
    c1 = jnp.float32((1.0 - ALPHA) * DROP_SCALE)
    c2 = jnp.float32(ALPHA)
    for _ in range(K_PROP):  # K is small & static -> fully unrolled, full scheduler visibility
        az = jnp.dot(adj, z.astype(jnp.bfloat16), preferred_element_type=jnp.float32)
        z = c1 * az + c2 * z

    o_ref[0] = z.astype(o_ref.dtype)


def init_params(key, in_feats, out_feats):
    """Mimic nn.Linear default init: U(-1/sqrt(fan_in), 1/sqrt(fan_in)) for weight and bias.
    Weights are stored transposed ([in, out]) so the kernel computes x @ W^T directly."""
    k1, k2, k3, k4 = jax.random.split(key, 4)
    bnd1 = 1.0 / math.sqrt(in_feats)
    bnd2 = 1.0 / math.sqrt(HID)
    w1_t = jax.random.uniform(k1, (in_feats, HID), jnp.float32, -bnd1, bnd1)
    b1 = jax.random.uniform(k2, (1, HID), jnp.float32, -bnd1, bnd1)
    w2_t = jax.random.uniform(k3, (HID, out_feats), jnp.float32, -bnd2, bnd2)
    b2 = jax.random.uniform(k4, (1, out_feats), jnp.float32, -bnd2, bnd2)
    return w1_t, b1, w2_t, b2


def pad_and_cast_params(params):
    """Pad feature dims to 128 lanes and cast weights to bf16.  Call ONCE outside any per-call
    loop so padding/casting is not repeated per inference call."""
    w1_t, b1, w2_t, b2 = params
    in_pad = ((w1_t.shape[0] + LANE - 1) // LANE) * LANE
    out_pad = ((w2_t.shape[1] + LANE - 1) // LANE) * LANE
    w1_p = _pad_to(w1_t, in_pad, 0).astype(jnp.bfloat16)   # [IN_PAD, HID]
    b1_p = b1.astype(jnp.float32)                          # [1, HID]   (HID == 128 already)
    w2_p = _pad_to(w2_t, out_pad, 1).astype(jnp.bfloat16)  # [HID, OUT_PAD]
    b2_p = _pad_to(b2, out_pad, 1).astype(jnp.float32)     # [1, OUT_PAD]
    return w1_p, b1_p, w2_p, b2_p


@functools.partial(jax.jit, static_argnames=("out_feats",))
def appnp_forward(x, adj, padded_params, out_feats):
    """x: [B, N, in_feats] f32, adj: [B, N, N] f32 -> [B, N, out_feats] f32."""
    w1_p, b1_p, w2_p, b2_p = padded_params
    B, N, _ = x.shape
    in_pad = w1_p.shape[0]
    out_pad = w2_p.shape[1]

    x_p = _pad_to(x, in_pad, 2).astype(jnp.bfloat16)
    adj_b = adj.astype(jnp.bfloat16)

    flops = 2 * B * N * (in_pad * HID + HID * out_pad + K_PROP * N * out_pad)
    bytes_accessed = (x_p.size * 2 + adj_b.size * 2 + w1_p.size * 2 + w2_p.size * 2
                      + b1_p.size * 4 + b2_p.size * 4 + B * N * out_pad * 4)

    out = pl.pallas_call(
        appnp_kernel,
        out_shape=jax.ShapeDtypeStruct((B, N, out_pad), jnp.float32),
        grid=(B,),
        in_specs=[
            pl.BlockSpec((1, N, in_pad), lambda b: (b, 0, 0)),   # per-graph features
            pl.BlockSpec((1, N, N), lambda b: (b, 0, 0)),        # per-graph adjacency
            pl.BlockSpec((in_pad, HID), lambda b: (0, 0)),       # weights: same block every step
            pl.BlockSpec((1, HID), lambda b: (0, 0)),
            pl.BlockSpec((HID, out_pad), lambda b: (0, 0)),
            pl.BlockSpec((1, out_pad), lambda b: (0, 0)),
        ],
        out_specs=pl.BlockSpec((1, N, out_pad), lambda b: (b, 0, 0)),
        compiler_params=pltpu.CompilerParams(dimension_semantics=("parallel",)),
        cost_estimate=pl.CostEstimate(flops=flops, transcendentals=0,
                                      bytes_accessed=bytes_accessed),
    )(x_p, adj_b, w1_p, b1_p, w2_p, b2_p)

    return out[:, :, :out_feats]


def reference_forward_one(x, adj, w1_t, b1, w2_t, b2):
    """Pure-JAX mirror of the kernel math (bf16 operands, f32 accumulation), unpadded shapes."""
    h = jnp.dot(x.astype(jnp.bfloat16), w1_t.astype(jnp.bfloat16),
                preferred_element_type=jnp.float32) + b1
    h = jnp.maximum(h, 0.0)
    z = jnp.dot(h.astype(jnp.bfloat16), w2_t.astype(jnp.bfloat16),
                preferred_element_type=jnp.float32) + b2
    adj_b = adj.astype(jnp.bfloat16)
    c1 = (1.0 - ALPHA) * DROP_SCALE
    for _ in range(K_PROP):
        z = c1 * jnp.dot(adj_b, z.astype(jnp.bfloat16),
                         preferred_element_type=jnp.float32) + ALPHA * z
    return z


if __name__ == "__main__":
    key = jax.random.PRNGKey(0)
    kx, ka, kp = jax.random.split(key, 3)

    B, N = 4, 128                  # small batch of small graphs; N multiple of 128 -> aligned M
    IN_FEATS, OUT_FEATS = 100, 18  # in_feats / out_feats of the appnp module

    x = jax.random.normal(kx, (B, N, IN_FEATS), jnp.float32)

    # random symmetric row-normalized adjacency with self loops, one per graph
    a = (jax.random.uniform(ka, (B, N, N)) < 0.05).astype(jnp.float32)
    a = jnp.maximum(a, jnp.swapaxes(a, -1, -2)) + jnp.eye(N, dtype=jnp.float32)[None]
    adj = a / jnp.sum(a, axis=-1, keepdims=True)

    params = init_params(kp, IN_FEATS, OUT_FEATS)
    padded_params = pad_and_cast_params(params)   # pad/cast once, outside the call

    out = appnp_forward(x, adj, padded_params, out_feats=OUT_FEATS)
    out = jax.block_until_ready(out)

    ref = jax.vmap(lambda xx, aa: reference_forward_one(xx, aa, *params))(x, adj)

    assert out.shape == (B, N, OUT_FEATS)
    assert jnp.allclose(out, ref, atol=1e-3, rtol=1e-3), "mismatch vs reference"

    print("KERNEL_OK")
</pallas_src>

<mosaic_0001>
module attributes {stable_mosaic.version = 11 : i64} {
  func.func @appnp_kernel(%arg0: i32, %arg1: memref<1x128x128xbf16, #tpu.memory_space<vmem>>, %arg2: memref<1x128x128xbf16, #tpu.memory_space<vmem>>, %arg3: memref<128x128xbf16, #tpu.memory_space<vmem>>, %arg4: memref<1x128xf32, #tpu.memory_space<vmem>>, %arg5: memref<128x128xbf16, #tpu.memory_space<vmem>>, %arg6: memref<1x128xf32, #tpu.memory_space<vmem>>, %arg7: memref<1x128x128xf32, #tpu.memory_space<vmem>>) attributes {dimension_semantics = [#tpu.dimension_semantics<parallel>], iteration_bounds = array<i64: 4>, scalar_prefetch = 0 : i64, scratch_operands = 0 : i64, tpu.core_type = #tpu.core_type<tc>, window_params = [{transform_indices = @transform_0, window_bounds = array<i64: 1, 128, 128>}, {transform_indices = @transform_1, window_bounds = array<i64: 1, 128, 128>}, {pipeline_mode = #tpu.pipeline_mode<synchronous>, transform_indices = @transform_2, window_bounds = array<i64: 128, 128>}, {pipeline_mode = #tpu.pipeline_mode<synchronous>, transform_indices = @transform_3, window_bounds = array<i64: 1, 128>}, {pipeline_mode = #tpu.pipeline_mode<synchronous>, transform_indices = @transform_4, window_bounds = array<i64: 128, 128>}, {pipeline_mode = #tpu.pipeline_mode<synchronous>, transform_indices = @transform_5, window_bounds = array<i64: 1, 128>}, {transform_indices = @transform_6, window_bounds = array<i64: 1, 128, 128>}]} {
    %c0 = arith.constant 0 : index
    %c0_0 = arith.constant 0 : index
    %c0_1 = arith.constant 0 : index
    %0 = vector.load %arg1[%c0, %c0_0, %c0_1] : memref<1x128x128xbf16, #tpu.memory_space<vmem>>, vector<1x128x128xbf16>
    %1 = vector.shape_cast %0 : vector<1x128x128xbf16> to vector<128x128xbf16>
    %c0_2 = arith.constant 0 : index
    %c0_3 = arith.constant 0 : index
    %c0_4 = arith.constant 0 : index
    %2 = vector.load %arg2[%c0_2, %c0_3, %c0_4] : memref<1x128x128xbf16, #tpu.memory_space<vmem>>, vector<1x128x128xbf16>
    %3 = vector.shape_cast %2 : vector<1x128x128xbf16> to vector<128x128xbf16>
    %c0_5 = arith.constant 0 : index
    %c0_6 = arith.constant 0 : index
    %4 = vector.load %arg3[%c0_5, %c0_6] : memref<128x128xbf16, #tpu.memory_space<vmem>>, vector<128x128xbf16>
    %cst = arith.constant dense<0.000000e+00> : vector<128x128xf32>
    %5 = tpu.matmul %1, %4, %cst {dimension_numbers = #tpu.dot_dimension_numbers<[1], [0], [0], [1], [0, 0, 1, 1], [], []>} : vector<128x128xbf16>, vector<128x128xbf16>, vector<128x128xf32> -> vector<128x128xf32>
    %c0_7 = arith.constant 0 : index
    %c0_8 = arith.constant 0 : index
    %6 = vector.load %arg4[%c0_7, %c0_8] : memref<1x128xf32, #tpu.memory_space<vmem>>, vector<1x128xf32>
    %7 = vector.broadcast %6 : vector<1x128xf32> to vector<128x128xf32>
    %8 = arith.addf %5, %7 : vector<128x128xf32>
    %cst_9 = arith.constant 0.000000e+00 : f32
    %9 = vector.broadcast %cst_9 : f32 to vector<128x128xf32>
    %10 = arith.maximumf %8, %9 : vector<128x128xf32>
    %11 = arith.truncf %10 : vector<128x128xf32> to vector<128x128xbf16>
    %c0_10 = arith.constant 0 : index
    %c0_11 = arith.constant 0 : index
    %12 = vector.load %arg5[%c0_10, %c0_11] : memref<128x128xbf16, #tpu.memory_space<vmem>>, vector<128x128xbf16>
    %cst_12 = arith.constant dense<0.000000e+00> : vector<128x128xf32>
    %13 = tpu.matmul %11, %12, %cst_12 {dimension_numbers = #tpu.dot_dimension_numbers<[1], [0], [0], [1], [0, 0, 1, 1], [], []>} : vector<128x128xbf16>, vector<128x128xbf16>, vector<128x128xf32> -> vector<128x128xf32>
    %c0_13 = arith.constant 0 : index
    %c0_14 = arith.constant 0 : index
    %14 = vector.load %arg6[%c0_13, %c0_14] : memref<1x128xf32, #tpu.memory_space<vmem>>, vector<1x128xf32>
    %15 = vector.broadcast %14 : vector<1x128xf32> to vector<128x128xf32>
    %16 = arith.addf %13, %15 : vector<128x128xf32>
    %17 = arith.truncf %16 : vector<128x128xf32> to vector<128x128xbf16>
    %cst_15 = arith.constant dense<0.000000e+00> : vector<128x128xf32>
    %18 = tpu.matmul %3, %17, %cst_15 {dimension_numbers = #tpu.dot_dimension_numbers<[1], [0], [0], [1], [0, 0, 1, 1], [], []>} : vector<128x128xbf16>, vector<128x128xbf16>, vector<128x128xf32> -> vector<128x128xf32>
    %cst_16 = arith.constant 9.899010e-01 : f32
    %19 = vector.broadcast %cst_16 : f32 to vector<128x128xf32>
    %20 = arith.mulf %19, %18 : vector<128x128xf32>
    %cst_17 = arith.constant 0.00999999977 : f32
    %21 = vector.broadcast %cst_17 : f32 to vector<128x128xf32>
    %22 = arith.mulf %21, %16 : vector<128x128xf32>
    %23 = arith.addf %20, %22 : vector<128x128xf32>
    %24 = arith.truncf %23 : vector<128x128xf32> to vector<128x128xbf16>
    %cst_18 = arith.constant dense<0.000000e+00> : vector<128x128xf32>
    %25 = tpu.matmul %3, %24, %cst_18 {dimension_numbers = #tpu.dot_dimension_numbers<[1], [0], [0], [1], [0, 0, 1, 1], [], []>} : vector<128x128xbf16>, vector<128x128xbf16>, vector<128x128xf32> -> vector<128x128xf32>
    %cst_19 = arith.constant 9.899010e-01 : f32
    %26 = vector.broadcast %cst_19 : f32 to vector<128x128xf32>
    %27 = arith.mulf %26, %25 : vector<128x128xf32>
    %cst_20 = arith.constant 0.00999999977 : f32
    %28 = vector.broadcast %cst_20 : f32 to vector<128x128xf32>
    %29 = arith.mulf %28, %23 : vector<128x128xf32>
    %30 = arith.addf %27, %29 : vector<128x128xf32>
    %31 = arith.truncf %30 : vector<128x128xf32> to vector<128x128xbf16>
    %cst_21 = arith.constant dense<0.000000e+00> : vector<128x128xf32>
    %32 = tpu.matmul %3, %31, %cst_21 {dimension_numbers = #tpu.dot_dimension_numbers<[1], [0], [0], [1], [0, 0, 1, 1], [], []>} : vector<128x128xbf16>, vector<128x128xbf16>, vector<128x128xf32> -> vector<128x128xf32>
    %cst_22 = arith.constant 9.899010e-01 : f32
    %33 = vector.broadcast %cst_22 : f32 to vector<128x128xf32>
    %34 = arith.mulf %33, %32 : vector<128x128xf32>
    %cst_23 = arith.constant 0.00999999977 : f32
    %35 = vector.broadcast %cst_23 : f32 to vector<128x128xf32>
    %36 = arith.mulf %35, %30 : vector<128x128xf32>
    %37 = arith.addf %34, %36 : vector<128x128xf32>
    %38 = arith.truncf %37 : vector<128x128xf32> to vector<128x128xbf16>
    %cst_24 = arith.constant dense<0.000000e+00> : vector<128x128xf32>
    %39 = tpu.matmul %3, %38, %cst_24 {dimension_numbers = #tpu.dot_dimension_numbers<[1], [0], [0], [1], [0, 0, 1, 1], [], []>} : vector<128x128xbf16>, vector<128x128xbf16>, vector<128x128xf32> -> vector<128x128xf32>
    %cst_25 = arith.constant 9.899010e-01 : f32
    %40 = vector.broadcast %cst_25 : f32 to vector<128x128xf32>
    %41 = arith.mulf %40, %39 : vector<128x128xf32>
    %cst_26 = arith.constant 0.00999999977 : f32
    %42 = vector.broadcast %cst_26 : f32 to vector<128x128xf32>
    %43 = arith.mulf %42, %37 : vector<128x128xf32>
    %44 = arith.addf %41, %43 : vector<128x128xf32>
    %45 = arith.truncf %44 : vector<128x128xf32> to vector<128x128xbf16>
    %cst_27 = arith.constant dense<0.000000e+00> : vector<128x128xf32>
    %46 = tpu.matmul %3, %45, %cst_27 {dimension_numbers = #tpu.dot_dimension_numbers<[1], [0], [0], [1], [0, 0, 1, 1], [], []>} : vector<128x128xbf16>, vector<128x128xbf16>, vector<128x128xf32> -> vector<128x128xf32>
    %cst_28 = arith.constant 9.899010e-01 : f32
    %47 = vector.broadcast %cst_28 : f32 to vector<128x128xf32>
    %48 = arith.mulf %47, %46 : vector<128x128xf32>
    %cst_29 = arith.constant 0.00999999977 : f32
    %49 = vector.broadcast %cst_29 : f32 to vector<128x128xf32>
    %50 = arith.mulf %49, %44 : vector<128x128xf32>
    %51 = arith.addf %48, %50 : vector<128x128xf32>
    %52 = arith.truncf %51 : vector<128x128xf32> to vector<128x128xbf16>
    %cst_30 = arith.constant dense<0.000000e+00> : vector<128x128xf32>
    %53 = tpu.matmul %3, %52, %cst_30 {dimension_numbers = #tpu.dot_dimension_numbers<[1], [0], [0], [1], [0, 0, 1, 1], [], []>} : vector<128x128xbf16>, vector<128x128xbf16>, vector<128x128xf32> -> vector<128x128xf32>
    %cst_31 = arith.constant 9.899010e-01 : f32
    %54 = vector.broadcast %cst_31 : f32 to vector<128x128xf32>
    %55 = arith.mulf %54, %53 : vector<128x128xf32>
    %cst_32 = arith.constant 0.00999999977 : f32
    %56 = vector.broadcast %cst_32 : f32 to vector<128x128xf32>
    %57 = arith.mulf %56, %51 : vector<128x128xf32>
    %58 = arith.addf %55, %57 : vector<128x128xf32>
    %59 = arith.truncf %58 : vector<128x128xf32> to vector<128x128xbf16>
    %cst_33 = arith.constant dense<0.000000e+00> : vector<128x128xf32>
    %60 = tpu.matmul %3, %59, %cst_33 {dimension_numbers = #tpu.dot_dimension_numbers<[1], [0], [0], [1], [0, 0, 1, 1], [], []>} : vector<128x128xbf16>, vector<128x128xbf16>, vector<128x128xf32> -> vector<128x128xf32>
    %cst_34 = arith.constant 9.899010e-01 : f32
    %61 = vector.broadcast %cst_34 : f32 to vector<128x128xf32>
    %62 = arith.mulf %61, %60 : vector<128x128xf32>
    %cst_35 = arith.constant 0.00999999977 : f32
    %63 = vector.broadcast %cst_35 : f32 to vector<128x128xf32>
    %64 = arith.mulf %63, %58 : vector<128x128xf32>
    %65 = arith.addf %62, %64 : vector<128x128xf32>
    %66 = arith.truncf %65 : vector<128x128xf32> to vector<128x128xbf16>
    %cst_36 = arith.constant dense<0.000000e+00> : vector<128x128xf32>
    %67 = tpu.matmul %3, %66, %cst_36 {dimension_numbers = #tpu.dot_dimension_numbers<[1], [0], [0], [1], [0, 0, 1, 1], [], []>} : vector<128x128xbf16>, vector<128x128xbf16>, vector<128x128xf32> -> vector<128x128xf32>
    %cst_37 = arith.constant 9.899010e-01 : f32
    %68 = vector.broadcast %cst_37 : f32 to vector<128x128xf32>
    %69 = arith.mulf %68, %67 : vector<128x128xf32>
    %cst_38 = arith.constant 0.00999999977 : f32
    %70 = vector.broadcast %cst_38 : f32 to vector<128x128xf32>
    %71 = arith.mulf %70, %65 : vector<128x128xf32>
    %72 = arith.addf %69, %71 : vector<128x128xf32>
    %73 = arith.truncf %72 : vector<128x128xf32> to vector<128x128xbf16>
    %cst_39 = arith.constant dense<0.000000e+00> : vector<128x128xf32>
    %74 = tpu.matmul %3, %73, %cst_39 {dimension_numbers = #tpu.dot_dimension_numbers<[1], [0], [0], [1], [0, 0, 1, 1], [], []>} : vector<128x128xbf16>, vector<128x128xbf16>, vector<128x128xf32> -> vector<128x128xf32>
    %cst_40 = arith.constant 9.899010e-01 : f32
    %75 = vector.broadcast %cst_40 : f32 to vector<128x128xf32>
    %76 = arith.mulf %75, %74 : vector<128x128xf32>
    %cst_41 = arith.constant 0.00999999977 : f32
    %77 = vector.broadcast %cst_41 : f32 to vector<128x128xf32>
    %78 = arith.mulf %77, %72 : vector<128x128xf32>
    %79 = arith.addf %76, %78 : vector<128x128xf32>
    %80 = arith.truncf %79 : vector<128x128xf32> to vector<128x128xbf16>
    %cst_42 = arith.constant dense<0.000000e+00> : vector<128x128xf32>
    %81 = tpu.matmul %3, %80, %cst_42 {dimension_numbers = #tpu.dot_dimension_numbers<[1], [0], [0], [1], [0, 0, 1, 1], [], []>} : vector<128x128xbf16>, vector<128x128xbf16>, vector<128x128xf32> -> vector<128x128xf32>
    %cst_43 = arith.constant 9.899010e-01 : f32
    %82 = vector.broadcast %cst_43 : f32 to vector<128x128xf32>
    %83 = arith.mulf %82, %81 : vector<128x128xf32>
    %cst_44 = arith.constant 0.00999999977 : f32
    %84 = vector.broadcast %cst_44 : f32 to vector<128x128xf32>
    %85 = arith.mulf %84, %79 : vector<128x128xf32>
    %86 = arith.addf %83, %85 : vector<128x128xf32>
    %c0_45 = arith.constant 0 : index
    %c0_46 = arith.constant 0 : index
    %c0_47 = arith.constant 0 : index
    %87 = vector.load %arg7[%c0_45, %c0_46, %c0_47] : memref<1x128x128xf32, #tpu.memory_space<vmem>>, vector<1x128x128xf32>
    %88 = vector.shape_cast %87 : vector<1x128x128xf32> to vector<128x128xf32>
    %89 = vector.shape_cast %86 : vector<128x128xf32> to vector<1x128x128xf32>
    tpu.vector_store %arg7[%c0_45, %c0_46, %c0_47], %89 {strides = array<i32>} : memref<1x128x128xf32, #tpu.memory_space<vmem>>, vector<1x128x128xf32>,
    return
  }
  func.func @transform_0(%arg0: i32) -> (i32, i32, i32) {
    %c0_i32 = arith.constant 0 : i32
    %c0_i32_0 = arith.constant 0 : i32
    %c0_i32_1 = arith.constant 0 : i32
    return %arg0, %c0_i32, %c0_i32_0 : i32, i32, i32
  }
  func.func @transform_1(%arg0: i32) -> (i32, i32, i32) {
    %c0_i32 = arith.constant 0 : i32
    %c0_i32_0 = arith.constant 0 : i32
    %c0_i32_1 = arith.constant 0 : i32
    return %arg0, %c0_i32, %c0_i32_0 : i32, i32, i32
  }
  func.func @transform_2(%arg0: i32) -> (i32, i32) {
    %c0_i32 = arith.constant 0 : i32
    %c0_i32_0 = arith.constant 0 : i32
    %c0_i32_1 = arith.constant 0 : i32
    return %c0_i32, %c0_i32_0 : i32, i32
  }
  func.func @transform_3(%arg0: i32) -> (i32, i32) {
    %c0_i32 = arith.constant 0 : i32
    %c0_i32_0 = arith.constant 0 : i32
    %c0_i32_1 = arith.constant 0 : i32
    return %c0_i32, %c0_i32_0 : i32, i32
  }
  func.func @transform_4(%arg0: i32) -> (i32, i32) {
    %c0_i32 = arith.constant 0 : i32
    %c0_i32_0 = arith.constant 0 : i32
    %c0_i32_1 = arith.constant 0 : i32
    return %c0_i32, %c0_i32_0 : i32, i32
  }
  func.func @transform_5(%arg0: i32) -> (i32, i32) {
    %c0_i32 = arith.constant 0 : i32
    %c0_i32_0 = arith.constant 0 : i32
    %c0_i32_1 = arith.constant 0 : i32
    return %c0_i32, %c0_i32_0 : i32, i32
  }
  func.func @transform_6(%arg0: i32) -> (i32, i32, i32) {
    %c0_i32 = arith.constant 0 : i32
    %c0_i32_0 = arith.constant 0 : i32
    %c0_i32_1 = arith.constant 0 : i32
    return %arg0, %c0_i32, %c0_i32_0 : i32, i32, i32
  }
}

</mosaic_0001>

<bundles_post_ra>
// kernel: appnp_forward.1
= control target key start
LH: loop header
LB: loop body
LE: loop exit
PB: predicated region body
PF: predicated region fallthrough
CT: control target
= control target key end

     0   :  { %s2028_s21 = smov 0   ;;  %s2907_s0 = inlined_call_operand.vmem [shape: bf16[4,128,128], index: 0, kind: input, shape index: {}]   ;;  %s2908_s1 = inlined_call_operand.vmem [shape: bf16[4,128,128], index: 1, kind: input, shape index: {}]   ;;  %s2909_s2 = inlined_call_operand.vmem [shape: bf16[128,128], index: 2, kind: input, shape index: {}]   ;;  %s2910_s3 = inlined_call_operand.vmem [shape: f32[1,128], index: 3, kind: input, shape index: {}]   ;;  %s2911_s4 = inlined_call_operand.vmem [shape: bf16[128,128], index: 4, kind: input, shape index: {}]   ;;  %s2912_s5 = inlined_call_operand.vmem [shape: f32[1,128], index: 5, kind: input, shape index: {}]   ;;  %s2913_s6 = inlined_call_operand.vmem [shape: f32[4,128,128], index: 6, kind: output, shape index: {}]  }
   0x1 LB: > { %s1791_s22 = sadd.s32 4294967295, %s1991_s21   ;;  %p1795_p0 = scmp.ge.s32.totalorder %s1991_s21, 1  ;;  %s1991_s21 = sphi %s2028_s21, %s16_s21  }
   0x2   : > { %p222_p1 = scmp.lt.s32.totalorder %s1991_s21, 5 }
   0x4   : > { %p223_p2 = pnand %p1795_p0, %p222_p1 }
   0x5   : > { %p257_p3 = scmp.lt.s32.totalorder (!%p223_p2), %s1791_s22, 3 }
   0x6   : > { %226 = sbr.rel (%p223_p2) target bundleno = 3298 (0xce2), region = 44 }
   0xb   : > { %v1958_v0 = vld [vmem:[%s2909_s2 + $0x38] sm:$0xff]  ;;  %v1957_v1 = vld [vmem:[%s2909_s2 + $0x30] sm:$0xff]  ;;  %v1956_v2 = vld [vmem:[%s2909_s2 + $0x28] sm:$0xff]  ;;  %s2915_s22 = smov (!%p257_p3, %s1791_s22), 3 }
   0xc   : > { %420 = vmatpush.bf16.msra.mxu0 %v1958_v0  ;;  %v1955_v3 = vld [vmem:[%s2909_s2 + $0x20] sm:$0xff]  ;;  %v1954_v4 = vld [vmem:[%s2909_s2 + $0x18] sm:$0xff]  ;;  %v1953_v5 = vld [vmem:[%s2909_s2 + $0x10] sm:$0xff]  ;;  %s1932_s13 = sshll.u32 %s2915_s22, 6 }
   0xd   : > { %v1952_v6 = vld [vmem:[%s2909_s2 + $0x8] sm:$0xff]  ;;  %v1951_v7 = vld [vmem:[%s2909_s2] sm:$0xff]  ;;  %s2068_s18 = scalar_lea.vmem %s2907_s0, %s1932_s13  ;;  %v1966_v13 = vld [vmem:[%s2911_s4 + $0x38] sm:$0xff]  ;;  %s2140_s20 = scalar_lea.vmem %s2908_s1, %s1932_s13 }
   0xe   : > { %v1935_v8 = vld [vmem:[%s2068_s18] sm:$0xff]  ;;  %v1936_v9 = vld [vmem:[%s2068_s18 + $0x8] sm:$0xff]  ;;  %v1937_v10 = vld [vmem:[%s2068_s18 + $0x10] sm:$0xff]  ;;  %561 = vmatpush.bf16.msra.mxu1 %v1966_v13  ;;  %s1934_s13 = sshll.u32 %s2915_s22, 7 }
   0xf   : > { %v1938_v11 = vld [vmem:[%s2068_s18 + $0x18] sm:$0xff]  ;;  %v1939_v12 = vld [vmem:[%s2068_s18 + $0x20] sm:$0xff]  ;;  %v1940_v14 = vld [vmem:[%s2068_s18 + $0x28] sm:$0xff]  ;;  %s2871_s25 = scalar_lea.vmem %s2913_s6, %s1934_s13 }
  0x10   : > { %421 = vmatpush.bf16.msra.mxu0 %v1957_v1  ;;  %v1965_v15 = vld [vmem:[%s2911_s4 + $0x30] sm:$0xff]  ;;  %v1964_v16 = vld [vmem:[%s2911_s4 + $0x28] sm:$0xff]  ;;  %v1963_v17 = vld [vmem:[%s2911_s4 + $0x20] sm:$0xff] }
  0x11   : > { %v1962_v18 = vld [vmem:[%s2911_s4 + $0x18] sm:$0xff]  ;;  %v1941_v19 = vld [vmem:[%s2068_s18 + $0x30] sm:$0xff]  ;;  %v1960_v21 = vld [vmem:[%s2911_s4 + $0x8] sm:$0xff] }
  0x12   : > { %562 = vmatpush.bf16.msra.mxu1 %v1965_v15  ;;  %v1961_v20 = vld [vmem:[%s2911_s4 + $0x10] sm:$0xff]  ;;  %v1959_v22 = vld [vmem:[%s2911_s4] sm:$0xff]  ;;  %v1942_v23 = vld [vmem:[%s2068_s18 + $0x38] sm:$0xff] }
  0x13   : > { %v1975_v25 = vld [vmem:[%s2910_s3] ss:$0 sm:$0xff] }
  0x14   : > { %422 = vmatpush.bf16.msra.mxu0 %v1956_v2 }
  0x16   : > { %563 = vmatpush.bf16.msra.mxu1 %v1964_v16 }
  0x18   : > { %423 = vmatpush.bf16.msra.mxu0 %v1955_v3 }
  0x1a   : > { %564 = vmatpush.bf16.msra.mxu1 %v1963_v17 }
  0x1c   : > { %424 = vmatpush.bf16.msra.mxu0 %v1954_v4 }
  0x1e   : > { %565 = vmatpush.bf16.msra.mxu1 %v1962_v18 }
  0x20   : > { %425 = vmatpush.bf16.msra.mxu0 %v1953_v5 }
  0x22   : > { %566 = vmatpush.bf16.msra.mxu1 %v1961_v20 }
  0x24   : > { %426 = vmatpush.bf16.msra.mxu0 %v1952_v6 }
  0x26   : > { %567 = vmatpush.bf16.msra.mxu1 %v1960_v21 }
  0x28   : > { %427 = vmatpush.bf16.msra.mxu0 %v1951_v7 }
  0x2a   : > { %568 = vmatpush.bf16.msra.mxu1 %v1959_v22 }
  0x2b   : > { %428 = vmatmul.bf16.vlgmr.msra.gmra.mxu0 %v1935_v8 }
  0x3b   : > { %433 = vmatmul.bf16.gmra.mxu0 %v1936_v9 }
  0x4b   : > { %438 = vmatmul.bf16.gmra.mxu0 %v1937_v10 }
  0x5b   : > { %443 = vmatmul.bf16.gmra.mxu0 %v1938_v11 }
  0x6b   : > { %448 = vmatmul.bf16.gmra.mxu0 %v1939_v12 }
  0x7b   : > { %453 = vmatmul.bf16.gmra.mxu0 %v1940_v14 }
  0x8b   : > { %458 = vmatmul.bf16.gmra.mxu0 %v1941_v19 }
  0x9b   : > { %463 = vmatmul.bf16.gmra.mxu0 %v1942_v23 }
  0xa8   : > { %v429_v24 = vpop.f32.mrf.mxu0 }
  0xa9   : > { %v430_v26 = vadd.f32 %v1975_v25, %v429_v24 }
  0xab   : > { %v469_v29 = vmax.f32 %v430_v26, 0.0 }
  0xb0   : > { %v431_v27 = vpop.f32.mrf.mxu0 }
  0xb1   : > { %v432_v28 = vadd.f32 %v1975_v25, %v431_v27 }
  0xb3   : > { %v470_v30 = vmax.f32 %v432_v28, 0.0 }
  0xb5   : > { %v485_v31 = vpack.c.bf16 %v470_v30, %v469_v29 }
  0xb7   : > { %569 = vmatmul.bf16.vlgmr.msra.gmra.mxu1 %v485_v31 }
  0xb8   : > { %v434_v32 = vpop.f32.mrf.mxu0 }
  0xb9   : > { %v435_v33 = vadd.f32 %v1975_v25, %v434_v32 }
  0xbb   : > { %v471_v36 = vmax.f32 %v435_v33, 0.0 }
  0xc0   : > { %v436_v34 = vpop.f32.mrf.mxu0 }
  0xc1   : > { %v437_v35 = vadd.f32 %v1975_v25, %v436_v34 }
  0xc3   : > { %v472_v37 = vmax.f32 %v437_v35, 0.0 }
  0xc5   : > { %v486_v38 = vpack.c.bf16 %v472_v37, %v471_v36 }
  0xc7   : > { %574 = vmatmul.bf16.gmra.mxu1 %v486_v38 }
  0xc8   : > { %v439_v39 = vpop.f32.mrf.mxu0 }
  0xc9   : > { %v440_v40 = vadd.f32 %v1975_v25, %v439_v39 }
  0xcb   : > { %v473_v43 = vmax.f32 %v440_v40, 0.0 }
  0xd0   : > { %v441_v41 = vpop.f32.mrf.mxu0 }
  0xd1   : > { %v442_v42 = vadd.f32 %v1975_v25, %v441_v41 }
  0xd3   : > { %v474_v44 = vmax.f32 %v442_v42, 0.0 }
  0xd5   : > { %v487_v45 = vpack.c.bf16 %v474_v44, %v473_v43 }
  0xd7   : > { %579 = vmatmul.bf16.gmra.mxu1 %v487_v45 }
  0xd8   : > { %v444_v46 = vpop.f32.mrf.mxu0 }
  0xd9   : > { %v445_v47 = vadd.f32 %v1975_v25, %v444_v46 }
  0xdb   : > { %v475_v50 = vmax.f32 %v445_v47, 0.0 }
  0xe0   : > { %v446_v48 = vpop.f32.mrf.mxu0 }
  0xe1   : > { %v447_v49 = vadd.f32 %v1975_v25, %v446_v48 }
  0xe3   : > { %v476_v51 = vmax.f32 %v447_v49, 0.0 }
  0xe5   : > { %v488_v52 = vpack.c.bf16 %v476_v51, %v475_v50 }
  0xe7   : > { %584 = vmatmul.bf16.gmra.mxu1 %v488_v52 }
  0xe8   : > { %v449_v53 = vpop.f32.mrf.mxu0 }
  0xe9   : > { %v450_v54 = vadd.f32 %v1975_v25, %v449_v53 }
  0xeb   : > { %v477_v57 = vmax.f32 %v450_v54, 0.0 }
  0xf0   : > { %v451_v55 = vpop.f32.mrf.mxu0 }
  0xf1   : > { %v452_v56 = vadd.f32 %v1975_v25, %v451_v55 }
  0xf3   : > { %v478_v58 = vmax.f32 %v452_v56, 0.0 }
  0xf5   : > { %v489_v59 = vpack.c.bf16 %v478_v58, %v477_v57  ;;  %v2143_v58 = vld [vmem:[%s2140_s20] sm:$0xff] }
  0xf7   : > { %589 = vmatmul.bf16.gmra.mxu1 %v489_v59  ;;  %v2147_v59 = vld [vmem:[%s2140_s20 + $0x8] sm:$0xff] }
  0xf8   : > { %v454_v60 = vpop.f32.mrf.mxu0 }
  0xf9   : > { %v455_v61 = vadd.f32 %v1975_v25, %v454_v60  ;;  %v2151_v60 = vld [vmem:[%s2140_s20 + $0x10] sm:$0xff] }
  0xfb   : > { %v479_v0 = vmax.f32 %v455_v61, 0.0  ;;  %v2155_v61 = vld [vmem:[%s2140_s20 + $0x18] sm:$0xff] }
 0x100   : > { %v456_v62 = vpop.f32.mrf.mxu0 }
 0x101   : > { %v457_v63 = vadd.f32 %v1975_v25, %v456_v62  ;;  %v2159_v62 = vld [vmem:[%s2140_s20 + $0x20] sm:$0xff] }
 0x103   : > { %v480_v1 = vmax.f32 %v457_v63, 0.0  ;;  %v2163_v63 = vld [vmem:[%s2140_s20 + $0x28] sm:$0xff] }
 0x105   : > { %v490_v2 = vpack.c.bf16 %v480_v1, %v479_v0  ;;  %v2167_v0 = vld [vmem:[%s2140_s20 + $0x30] sm:$0xff]  ;;  %v2171_v1 = vld [vmem:[%s2140_s20 + $0x38] sm:$0xff] }
 0x107   : > { %594 = vmatmul.bf16.gmra.mxu1 %v490_v2 }
 0x108   : > { %v459_v3 = vpop.f32.mrf.mxu0 }
 0x109   : > { %v460_v4 = vadd.f32 %v1975_v25, %v459_v3 }
 0x10b   : > { %v481_v7 = vmax.f32 %v460_v4, 0.0 }
 0x110   : > { %v461_v5 = vpop.f32.mrf.mxu0 }
 0x111   : > { %v462_v6 = vadd.f32 %v1975_v25, %v461_v5 }
 0x113   : > { %v482_v8 = vmax.f32 %v462_v6, 0.0 }
 0x115   : > { %v491_v9 = vpack.c.bf16 %v482_v8, %v481_v7 }
 0x117   : > { %599 = vmatmul.bf16.gmra.mxu1 %v491_v9 }
 0x118   : > { %v464_v10 = vpop.f32.mrf.mxu0 }
 0x119   : > { %v465_v11 = vadd.f32 %v1975_v25, %v464_v10 }
 0x11b   : > { %v483_v14 = vmax.f32 %v465_v11, 0.0 }
 0x120   : > { %v466_v12 = vpop.f32.mrf.mxu0 }
 0x121   : > { %v467_v13 = vadd.f32 %v1975_v25, %v466_v12  ;;  %v1976_v25 = vld [vmem:[%s2912_s5] ss:$0 sm:$0xff] }
 0x123   : > { %v484_v15 = vmax.f32 %v467_v13, 0.0 }
 0x125   : > { %v492_v16 = vpack.c.bf16 %v484_v15, %v483_v14 }
 0x127   : > { %604 = vmatmul.bf16.gmra.mxu1 %v492_v16 }
 0x134   : > { %v570_v17 = vpop.f32.mrf.mxu1 }
 0x135   : > { %v571_v56 = vadd.f32 %v1976_v25, %v570_v17 }
 0x137   : > { %v731_v3 = vmul.f32 0.01, %v571_v56 }
 0x13c   : > { %v572_v18 = vpop.f32.mrf.mxu1 }
 0x13d   : > { %v573_v54 = vadd.f32 %v1976_v25, %v572_v18 }
 0x13f   : > { %v610_v57 = vpack.c.bf16 %v573_v54, %v571_v56  ;;  %v732_v7 = vmul.f32 0.01, %v573_v54 }
 0x144   : > { %v575_v19 = vpop.f32.mrf.mxu1 }
 0x145   : > { %v576_v53 = vadd.f32 %v1976_v25, %v575_v19 }
 0x147   : > { %v733_v12 = vmul.f32 0.01, %v576_v53 }
 0x14c   : > { %v577_v20 = vpop.f32.mrf.mxu1 }
 0x14d   : > { %v578_v51 = vadd.f32 %v1976_v25, %v577_v20 }
 0x14f   : > { %v611_v55 = vpack.c.bf16 %v578_v51, %v576_v53  ;;  %v734_v16 = vmul.f32 0.01, %v578_v51 }
 0x154   : > { %v580_v21 = vpop.f32.mrf.mxu1 }
 0x155   : > { %v581_v50 = vadd.f32 %v1976_v25, %v580_v21 }
 0x157   : > { %v735_v21 = vmul.f32 0.01, %v581_v50 }
 0x15c   : > { %v582_v22 = vpop.f32.mrf.mxu1 }
 0x15d   : > { %v583_v48 = vadd.f32 %v1976_v25, %v582_v22 }
 0x15f   : > { %v612_v52 = vpack.c.bf16 %v583_v48, %v581_v50 }
 0x164   : > { %v585_v23 = vpop.f32.mrf.mxu1 }
 0x165   : > { %v586_v47 = vadd.f32 %v1976_v25, %v585_v23 }
 0x16c   : > { %v587_v24 = vpop.f32.mrf.mxu1 }
 0x16d   : > { %v2130_v45 = vadd.f32 %v1976_v25, %v587_v24 }
 0x16f   : > { %v613_v49 = vpack.c.bf16 %v2130_v45, %v586_v47 }
 0x174   : > { %v590_v26 = vpop.f32.mrf.mxu1 }
 0x175   : > { %v2128_v44 = vadd.f32 %v1976_v25, %v590_v26  ;;  %v736_v26 = vmul.f32 0.01, %v583_v48 }
 0x17c   : > { %v592_v27 = vpop.f32.mrf.mxu1 }
 0x17d   : > { %v2124_v42 = vadd.f32 %v1976_v25, %v592_v27 }
 0x17f   : > { %v614_v46 = vpack.c.bf16 %v2124_v42, %v2128_v44 }
 0x184   : > { %v595_v28 = vpop.f32.mrf.mxu1 }
 0x185   : > { %v2122_v41 = vadd.f32 %v1976_v25, %v595_v28 }
 0x18c   : > { %v597_v29 = vpop.f32.mrf.mxu1 }
 0x18d   : > { %v2118_v39 = vadd.f32 %v1976_v25, %v597_v29 }
 0x18f   : > { %v615_v43 = vpack.c.bf16 %v2118_v39, %v2122_v41 }
 0x194   : > { %v600_v30 = vpop.f32.mrf.mxu1 }
 0x195   : > { %v2116_v38 = vadd.f32 %v1976_v25, %v600_v30 }
 0x19c   : > { %v602_v31 = vpop.f32.mrf.mxu1 }
 0x19d   : > { %v2112_v36 = vadd.f32 %v1976_v25, %v602_v31  ;;  %v737_v31 = vmul.f32 0.01, %v586_v47  ;;  %v740_v47 = vmul.f32 0.01, %v2124_v42 }
 0x19f   : > { %v616_v40 = vpack.c.bf16 %v2112_v36, %v2116_v38 }
 0x1a4   : > { %v605_v32 = vpop.f32.mrf.mxu1 }
 0x1a5   : > { %v2108_v34 = vadd.f32 %v1976_v25, %v605_v32 }
 0x1ac   : > { %v607_v33 = vpop.f32.mrf.mxu1 }
 0x1ad   : > { %v2110_v35 = vadd.f32 %v1976_v25, %v607_v33 }
 0x1af   : > { %v617_v37 = vpack.c.bf16 %v2110_v35, %v2108_v34 }
 0x1b1   : > { %666 = vmatpush.bf16.msra.mxu2 %v617_v37  ;;  %v738_v37 = vmul.f32 0.01, %v2130_v45 }
 0x1b5   : > { %667 = vmatpush.bf16.msra.mxu2 %v616_v40 }
 0x1b9   : > { %668 = vmatpush.bf16.msra.mxu2 %v615_v43 }
 0x1bd   : > { %669 = vmatpush.bf16.msra.mxu2 %v614_v46 }
 0x1c1   : > { %670 = vmatpush.bf16.msra.mxu2 %v613_v49  ;;  %v739_v49 = vmul.f32 0.01, %v2128_v44 }
 0x1c5   : > { %671 = vmatpush.bf16.msra.mxu2 %v612_v52 }
 0x1c9   : > { %672 = vmatpush.bf16.msra.mxu2 %v611_v55 }
 0x1cd   : > { %673 = vmatpush.bf16.msra.mxu2 %v610_v57 }
 0x1d0   : > { %674 = vmatmul.bf16.vlgmr.msra.gmra.mxu2 %v2143_v58 }
 0x1e0   : > { %679 = vmatmul.bf16.gmra.mxu2 %v2147_v59 }
 0x1f0   : > { %684 = vmatmul.bf16.gmra.mxu2 %v2151_v60 }
 0x200   : > { %689 = vmatmul.bf16.gmra.mxu2 %v2155_v61 }
 0x210   : > { %694 = vmatmul.bf16.gmra.mxu2 %v2159_v62 }
 0x220   : > { %699 = vmatmul.bf16.gmra.mxu2 %v2163_v63 }
 0x230   : > { %704 = vmatmul.bf16.gmra.mxu2 %v2167_v0 }
 0x240   : > { %709 = vmatmul.bf16.gmra.mxu2 %v2171_v1 }
 0x253   : > { %v675_v2 = vpop.f32.mrf.mxu2 }
 0x254   : > { %v715_v4 = vmul.f32 0.989901, %v675_v2  ;;  %v741_v2 = vmul.f32 0.01, %v2122_v41 }
 0x256   : > { %v2174_v5 = vadd.f32 %v731_v3, %v715_v4  ;;  %v742_v3 = vmul.f32 0.01, %v2118_v39 }
 0x25b   : > { %v677_v6 = vpop.f32.mrf.mxu2 }
 0x25c   : > { %v716_v8 = vmul.f32 0.989901, %v677_v6 }
 0x25e   : > { %v2176_v9 = vadd.f32 %v732_v7, %v716_v8 }
 0x260   : > { %v763_v10 = vpack.c.bf16 %v2176_v9, %v2174_v5 }
 0x263   : > { %v680_v11 = vpop.f32.mrf.mxu2 }
 0x264   : > { %v717_v13 = vmul.f32 0.989901, %v680_v11 }
 0x266   : > { %v2180_v14 = vadd.f32 %v733_v12, %v717_v13  ;;  %v743_v12 = vmul.f32 0.01, %v2116_v38  ;;  %v744_v13 = vmul.f32 0.01, %v2112_v36 }
 0x26b   : > { %v682_v15 = vpop.f32.mrf.mxu2 }
 0x26c   : > { %v718_v17 = vmul.f32 0.989901, %v682_v15 }
 0x26e   : > { %v2182_v18 = vadd.f32 %v734_v16, %v718_v17 }
 0x270   : > { %v764_v19 = vpack.c.bf16 %v2182_v18, %v2180_v14 }
 0x273   : > { %v685_v20 = vpop.f32.mrf.mxu2 }
 0x274   : > { %v719_v22 = vmul.f32 0.989901, %v685_v20 }
 0x276   : > { %v2186_v23 = vadd.f32 %v735_v21, %v719_v22  ;;  %v745_v22 = vmul.f32 0.01, %v2108_v34 }
 0x27b   : > { %v687_v24 = vpop.f32.mrf.mxu2 }
 0x27c   : > { %v720_v27 = vmul.f32 0.989901, %v687_v24  ;;  %v746_v24 = vmul.f32 0.01, %v2110_v35 }
 0x27e   : > { %v2188_v28 = vadd.f32 %v736_v26, %v720_v27 }
 0x280   : > { %v765_v29 = vpack.c.bf16 %v2188_v28, %v2186_v23 }
 0x283   : > { %v690_v30 = vpop.f32.mrf.mxu2 }
 0x284   : > { %v721_v32 = vmul.f32 0.989901, %v690_v30 }
 0x286   : > { %v2192_v25 = vadd.f32 %v737_v31, %v721_v32  ;;  %v837_v31 = vmul.f32 0.01, %v2176_v9 }
 0x28b   : > { %v692_v33 = vpop.f32.mrf.mxu2 }
 0x28c   : > { %v722_v40 = vmul.f32 0.989901, %v692_v33 }
 0x28e   : > { %v2195_v43 = vadd.f32 %v738_v37, %v722_v40 }
 0x290   : > { %v766_v46 = vpack.c.bf16 %v2195_v43, %v2192_v25 }
 0x293   : > { %v695_v48 = vpop.f32.mrf.mxu2 }
 0x294   : > { %v723_v50 = vmul.f32 0.989901, %v695_v48 }
 0x296   : > { %v2200_v51 = vadd.f32 %v739_v49, %v723_v50 }
 0x29b   : > { %v697_v52 = vpop.f32.mrf.mxu2 }
 0x29c   : > { %v724_v53 = vmul.f32 0.989901, %v697_v52 }
 0x29e   : > { %v2203_v54 = vadd.f32 %v740_v47, %v724_v53 }
 0x2a0   : > { %v767_v45 = vpack.c.bf16 %v2203_v54, %v2200_v51 }
 0x2a3   : > { %v700_v55 = vpop.f32.mrf.mxu2 }
 0x2a4   : > { %v725_v56 = vmul.f32 0.989901, %v700_v55 }
 0x2a6   : > { %v2209_v4 = vadd.f32 %v741_v2, %v725_v56 }
 0x2ab   : > { %v702_v57 = vpop.f32.mrf.mxu2 }
 0x2ac   : > { %v726_v44 = vmul.f32 0.989901, %v702_v57 }
 0x2ae   : > { %v2211_v6 = vadd.f32 %v742_v3, %v726_v44 }
 0x2b0   : > { %v768_v42 = vpack.c.bf16 %v2211_v6, %v2209_v4 }
 0x2b3   : > { %v705_v7 = vpop.f32.mrf.mxu2 }
 0x2b4   : > { %v727_v8 = vmul.f32 0.989901, %v705_v7 }
 0x2b6   : > { %v2217_v16 = vadd.f32 %v743_v12, %v727_v8 }
 0x2bb   : > { %v707_v11 = vpop.f32.mrf.mxu2 }
 0x2bc   : > { %v728_v15 = vmul.f32 0.989901, %v707_v11 }
 0x2be   : > { %v2219_v41 = vadd.f32 %v744_v13, %v728_v15 }
 0x2c0   : > { %v769_v39 = vpack.c.bf16 %v2219_v41, %v2217_v16 }
 0x2c3   : > { %v710_v17 = vpop.f32.mrf.mxu2 }
 0x2c4   : > { %v729_v20 = vmul.f32 0.989901, %v710_v17 }
 0x2c6   : > { %v2225_v27 = vadd.f32 %v745_v22, %v729_v20 }
 0x2cb   : > { %v712_v21 = vpop.f32.mrf.mxu2 }
 0x2cc   : > { %v730_v26 = vmul.f32 0.989901, %v712_v21 }
 0x2ce   : > { %v2227_v38 = vadd.f32 %v746_v24, %v730_v26 }
 0x2d0   : > { %v770_v36 = vpack.c.bf16 %v2227_v38, %v2225_v27 }
 0x2d2   : > { %771 = vmatpush.bf16.msra.mxu3 %v770_v36 }
 0x2d6   : > { %772 = vmatpush.bf16.msra.mxu3 %v769_v39  ;;  %v844_v39 = vmul.f32 0.01, %v2200_v51 }
 0x2da   : > { %773 = vmatpush.bf16.msra.mxu3 %v768_v42  ;;  %v842_v42 = vmul.f32 0.01, %v2192_v25  ;;  %v845_v25 = vmul.f32 0.01, %v2203_v54 }
 0x2de   : > { %774 = vmatpush.bf16.msra.mxu3 %v767_v45  ;;  %v840_v45 = vmul.f32 0.01, %v2186_v23  ;;  %v843_v23 = vmul.f32 0.01, %v2195_v43 }
 0x2e2   : > { %775 = vmatpush.bf16.msra.mxu3 %v766_v46  ;;  %v838_v46 = vmul.f32 0.01, %v2180_v14  ;;  %v841_v14 = vmul.f32 0.01, %v2188_v28 }
 0x2e6   : > { %776 = vmatpush.bf16.msra.mxu3 %v765_v29 }
 0x2ea   : > { %777 = vmatpush.bf16.msra.mxu3 %v764_v19 }
 0x2ee   : > { %778 = vmatpush.bf16.msra.mxu3 %v763_v10  ;;  %v836_v10 = vmul.f32 0.01, %v2174_v5  ;;  %v839_v5 = vmul.f32 0.01, %v2182_v18 }
 0x2f1   : > { %779 = vmatmul.bf16.vlgmr.msra.gmra.mxu3 %v2143_v58 }
 0x301   : > { %784 = vmatmul.bf16.gmra.mxu3 %v2147_v59 }
 0x311   : > { %789 = vmatmul.bf16.gmra.mxu3 %v2151_v60 }
 0x321   : > { %794 = vmatmul.bf16.gmra.mxu3 %v2155_v61 }
 0x331   : > { %799 = vmatmul.bf16.gmra.mxu3 %v2159_v62 }
 0x341   : > { %804 = vmatmul.bf16.gmra.mxu3 %v2163_v63 }
 0x351   : > { %809 = vmatmul.bf16.gmra.mxu3 %v2167_v0 }
 0x361   : > { %814 = vmatmul.bf16.gmra.mxu3 %v2171_v1 }
 0x374   : > { %v780_v34 = vpop.f32.mrf.mxu3 }
 0x375   : > { %v820_v35 = vmul.f32 0.989901, %v780_v34  ;;  %v846_v34 = vmul.f32 0.01, %v2209_v4 }
 0x377   : > { %v2243_v19 = vadd.f32 %v836_v10, %v820_v35  ;;  %v847_v10 = vmul.f32 0.01, %v2211_v6 }
 0x37c   : > { %v782_v29 = vpop.f32.mrf.mxu3 }
 0x37d   : > { %v821_v30 = vmul.f32 0.989901, %v782_v29 }
 0x37f   : > { %v2246_v32 = vadd.f32 %v837_v31, %v821_v30 }
 0x381   : > { %v868_v33 = vpack.c.bf16 %v2246_v32, %v2243_v19 }
 0x384   : > { %v785_v37 = vpop.f32.mrf.mxu3 }
 0x385   : > { %v822_v40 = vmul.f32 0.989901, %v785_v37 }
 0x387   : > { %v2251_v48 = vadd.f32 %v838_v46, %v822_v40  ;;  %v848_v40 = vmul.f32 0.01, %v2217_v16 }
 0x38c   : > { %v787_v49 = vpop.f32.mrf.mxu3 }
 0x38d   : > { %v823_v50 = vmul.f32 0.989901, %v787_v49  ;;  %v849_v49 = vmul.f32 0.01, %v2219_v41 }
 0x38f   : > { %v2254_v52 = vadd.f32 %v839_v5, %v823_v50 }
 0x391   : > { %v869_v9 = vpack.c.bf16 %v2254_v52, %v2251_v48 }
 0x394   : > { %v790_v47 = vpop.f32.mrf.mxu3 }
 0x395   : > { %v824_v53 = vmul.f32 0.989901, %v790_v47 }
 0x397   : > { %v2259_v55 = vadd.f32 %v840_v45, %v824_v53  ;;  %v850_v45 = vmul.f32 0.01, %v2225_v27 }
 0x39c   : > { %v792_v56 = vpop.f32.mrf.mxu3 }
 0x39d   : > { %v825_v57 = vmul.f32 0.989901, %v792_v56  ;;  %v851_v56 = vmul.f32 0.01, %v2227_v38 }
 0x39f   : > { %v2262_v2 = vadd.f32 %v841_v14, %v825_v57 }
 0x3a1   : > { %v870_v18 = vpack.c.bf16 %v2262_v2, %v2259_v55 }
 0x3a4   : > { %v795_v3 = vpop.f32.mrf.mxu3 }
 0x3a5   : > { %v826_v44 = vmul.f32 0.989901, %v795_v3 }
 0x3a7   : > { %v2267_v7 = vadd.f32 %v842_v42, %v826_v44  ;;  %v942_v44 = vmul.f32 0.01, %v2246_v32 }
 0x3ac   : > { %v797_v8 = vpop.f32.mrf.mxu3 }
 0x3ad   : > { %v827_v11 = vmul.f32 0.989901, %v797_v8 }
 0x3af   : > { %v2270_v12 = vadd.f32 %v843_v23, %v827_v11 }
 0x3b1   : > { %v871_v28 = vpack.c.bf16 %v2270_v12, %v2267_v7 }
 0x3b4   : > { %v800_v13 = vpop.f32.mrf.mxu3 }
 0x3b5   : > { %v828_v15 = vmul.f32 0.989901, %v800_v13 }
 0x3b7   : > { %v2275_v17 = vadd.f32 %v844_v39, %v828_v15 }
 0x3bc   : > { %v802_v20 = vpop.f32.mrf.mxu3 }
 0x3bd   : > { %v829_v21 = vmul.f32 0.989901, %v802_v20 }
 0x3bf   : > { %v2278_v22 = vadd.f32 %v845_v25, %v829_v21 }
 0x3c1   : > { %v872_v43 = vpack.c.bf16 %v2278_v22, %v2275_v17 }
 0x3c4   : > { %v805_v24 = vpop.f32.mrf.mxu3 }
 0x3c5   : > { %v830_v26 = vmul.f32 0.989901, %v805_v24 }
 0x3c7   : > { %v2284_v51 = vadd.f32 %v846_v34, %v830_v26 }
 0x3cc   : > { %v807_v36 = vpop.f32.mrf.mxu3 }
 0x3cd   : > { %v831_v35 = vmul.f32 0.989901, %v807_v36 }
 0x3cf   : > { %v2286_v29 = vadd.f32 %v847_v10, %v831_v35 }
 0x3d1   : > { %v873_v54 = vpack.c.bf16 %v2286_v29, %v2284_v51 }
 0x3d4   : > { %v810_v30 = vpop.f32.mrf.mxu3 }
 0x3d5   : > { %v832_v31 = vmul.f32 0.989901, %v810_v30 }
 0x3d7   : > { %v2292_v50 = vadd.f32 %v848_v40, %v832_v31 }
 0x3dc   : > { %v812_v37 = vpop.f32.mrf.mxu3 }
 0x3dd   : > { %v833_v46 = vmul.f32 0.989901, %v812_v37 }
 0x3df   : > { %v2294_v4 = vadd.f32 %v849_v49, %v833_v46 }
 0x3e1   : > { %v874_v6 = vpack.c.bf16 %v2294_v4, %v2292_v50 }
 0x3e4   : > { %v815_v5 = vpop.f32.mrf.mxu3 }
 0x3e5   : > { %v834_v47 = vmul.f32 0.989901, %v815_v5 }
 0x3e7   : > { %v2300_v14 = vadd.f32 %v850_v45, %v834_v47 }
 0x3ec   : > { %v817_v53 = vpop.f32.mrf.mxu3 }
 0x3ed   : > { %v835_v57 = vmul.f32 0.989901, %v817_v53 }
 0x3ef   : > { %v2302_v16 = vadd.f32 %v851_v56, %v835_v57 }
 0x3f1   : > { %v875_v41 = vpack.c.bf16 %v2302_v16, %v2300_v14 }
 0x3f3   : > { %876 = vmatpush.bf16.msrb.mxu0 %v875_v41 }
 0x3f7   : > { %877 = vmatpush.bf16.msrb.mxu0 %v874_v6  ;;  %v949_v6 = vmul.f32 0.01, %v2275_v17 }
 0x3fb   : > { %878 = vmatpush.bf16.msrb.mxu0 %v873_v54  ;;  %v947_v54 = vmul.f32 0.01, %v2267_v7  ;;  %v950_v7 = vmul.f32 0.01, %v2278_v22 }
 0x3ff   : > { %879 = vmatpush.bf16.msrb.mxu0 %v872_v43  ;;  %v945_v43 = vmul.f32 0.01, %v2259_v55  ;;  %v948_v55 = vmul.f32 0.01, %v2270_v12 }
 0x403   : > { %880 = vmatpush.bf16.msrb.mxu0 %v871_v28  ;;  %v943_v28 = vmul.f32 0.01, %v2251_v48  ;;  %v946_v48 = vmul.f32 0.01, %v2262_v2 }
 0x407   : > { %881 = vmatpush.bf16.msrb.mxu0 %v870_v18 }
 0x40b   : > { %882 = vmatpush.bf16.msrb.mxu0 %v869_v9 }
 0x40f   : > { %883 = vmatpush.bf16.msrb.mxu0 %v868_v33  ;;  %v941_v33 = vmul.f32 0.01, %v2243_v19  ;;  %v944_v19 = vmul.f32 0.01, %v2254_v52 }
 0x412   : > { %884 = vmatmul.bf16.vlgmr.msrb.gmra.mxu0 %v2143_v58 }
 0x422   : > { %889 = vmatmul.bf16.gmra.mxu0 %v2147_v59 }
 0x432   : > { %894 = vmatmul.bf16.gmra.mxu0 %v2151_v60 }
 0x442   : > { %899 = vmatmul.bf16.gmra.mxu0 %v2155_v61 }
 0x452   : > { %904 = vmatmul.bf16.gmra.mxu0 %v2159_v62 }
 0x462   : > { %909 = vmatmul.bf16.gmra.mxu0 %v2163_v63 }
 0x472   : > { %914 = vmatmul.bf16.gmra.mxu0 %v2167_v0 }
 0x482   : > { %919 = vmatmul.bf16.gmra.mxu0 %v2171_v1 }
 0x48f   : > { %v885_v27 = vpop.f32.mrf.mxu0 }
 0x490   : > { %v925_v38 = vmul.f32 0.989901, %v885_v27  ;;  %v951_v27 = vmul.f32 0.01, %v2284_v51 }
 0x492   : > { %v2318_v9 = vadd.f32 %v941_v33, %v925_v38  ;;  %v952_v33 = vmul.f32 0.01, %v2286_v29 }
 0x497   : > { %v887_v18 = vpop.f32.mrf.mxu0 }
 0x498   : > { %v926_v3 = vmul.f32 0.989901, %v887_v18 }
 0x49a   : > { %v2321_v42 = vadd.f32 %v942_v44, %v926_v3 }
 0x49c   : > { %v973_v8 = vpack.c.bf16 %v2321_v42, %v2318_v9 }
 0x49f   : > { %v890_v11 = vpop.f32.mrf.mxu0 }
 0x4a0   : > { %v927_v23 = vmul.f32 0.989901, %v890_v11 }
 0x4a2   : > { %v2326_v13 = vadd.f32 %v943_v28, %v927_v23  ;;  %v953_v23 = vmul.f32 0.01, %v2292_v50 }
 0x4a7   : > { %v892_v15 = vpop.f32.mrf.mxu0 }
 0x4a8   : > { %v928_v39 = vmul.f32 0.989901, %v892_v15  ;;  %v954_v15 = vmul.f32 0.01, %v2294_v4 }
 0x4aa   : > { %v2329_v20 = vadd.f32 %v944_v19, %v928_v39 }
 0x4ac   : > { %v974_v32 = vpack.c.bf16 %v2329_v20, %v2326_v13 }
 0x4af   : > { %v895_v21 = vpop.f32.mrf.mxu0 }
 0x4b0   : > { %v929_v25 = vmul.f32 0.989901, %v895_v21 }
 0x4b2   : > { %v2334_v24 = vadd.f32 %v945_v43, %v929_v25  ;;  %v955_v43 = vmul.f32 0.01, %v2300_v14 }
 0x4b7   : > { %v897_v26 = vpop.f32.mrf.mxu0 }
 0x4b8   : > { %v930_v36 = vmul.f32 0.989901, %v897_v26 }
 0x4ba   : > { %v2337_v34 = vadd.f32 %v946_v48, %v930_v36  ;;  %v956_v36 = vmul.f32 0.01, %v2302_v16 }
 0x4bc   : > { %v975_v52 = vpack.c.bf16 %v2337_v34, %v2334_v24 }
 0x4bf   : > { %v900_v35 = vpop.f32.mrf.mxu0 }
 0x4c0   : > { %v931_v10 = vmul.f32 0.989901, %v900_v35 }
 0x4c2   : > { %v2342_v30 = vadd.f32 %v947_v54, %v931_v10  ;;  %v1047_v10 = vmul.f32 0.01, %v2321_v42 }
 0x4c7   : > { %v902_v31 = vpop.f32.mrf.mxu0 }
 0x4c8   : > { %v932_v37 = vmul.f32 0.989901, %v902_v31 }
 0x4ca   : > { %v2345_v40 = vadd.f32 %v948_v55, %v932_v37 }
 0x4cc   : > { %v976_v2 = vpack.c.bf16 %v2345_v40, %v2342_v30 }
 0x4cf   : > { %v905_v46 = vpop.f32.mrf.mxu0 }
 0x4d0   : > { %v933_v49 = vmul.f32 0.989901, %v905_v46 }
 0x4d2   : > { %v2350_v5 = vadd.f32 %v949_v6, %v933_v49 }
 0x4d7   : > { %v907_v47 = vpop.f32.mrf.mxu0 }
 0x4d8   : > { %v934_v53 = vmul.f32 0.989901, %v907_v47 }
 0x4da   : > { %v2353_v45 = vadd.f32 %v950_v7, %v934_v53 }
 0x4dc   : > { %v977_v12 = vpack.c.bf16 %v2353_v45, %v2350_v5 }
 0x4df   : > { %v910_v56 = vpop.f32.mrf.mxu0 }
 0x4e0   : > { %v935_v57 = vmul.f32 0.989901, %v910_v56 }
 0x4e2   : > { %v2359_v17 = vadd.f32 %v951_v27, %v935_v57 }
 0x4e7   : > { %v912_v41 = vpop.f32.mrf.mxu0 }
 0x4e8   : > { %v936_v38 = vmul.f32 0.989901, %v912_v41 }
 0x4ea   : > { %v2361_v18 = vadd.f32 %v952_v33, %v936_v38 }
 0x4ec   : > { %v978_v22 = vpack.c.bf16 %v2361_v18, %v2359_v17 }
 0x4ef   : > { %v915_v3 = vpop.f32.mrf.mxu0 }
 0x4f0   : > { %v937_v44 = vmul.f32 0.989901, %v915_v3 }
 0x4f2   : > { %v2367_v39 = vadd.f32 %v953_v23, %v937_v44 }
 0x4f7   : > { %v917_v11 = vpop.f32.mrf.mxu0 }
 0x4f8   : > { %v938_v28 = vmul.f32 0.989901, %v917_v11 }
 0x4fa   : > { %v2369_v51 = vadd.f32 %v954_v15, %v938_v28 }
 0x4fc   : > { %v979_v29 = vpack.c.bf16 %v2369_v51, %v2367_v39 }
 0x4ff   : > { %v920_v19 = vpop.f32.mrf.mxu0 }
 0x500   : > { %v939_v21 = vmul.f32 0.989901, %v920_v19 }
 0x502   : > { %v2375_v48 = vadd.f32 %v955_v43, %v939_v21 }
 0x507   : > { %v922_v25 = vpop.f32.mrf.mxu0 }
 0x508   : > { %v940_v26 = vmul.f32 0.989901, %v922_v25 }
 0x50a   : > { %v2377_v50 = vadd.f32 %v956_v36, %v940_v26 }
 0x50c   : > { %v980_v4 = vpack.c.bf16 %v2377_v50, %v2375_v48 }
 0x50e   : > { %981 = vmatpush.bf16.msrb.mxu1 %v980_v4 }
 0x512   : > { %982 = vmatpush.bf16.msrb.mxu1 %v979_v29  ;;  %v1054_v29 = vmul.f32 0.01, %v2350_v5 }
 0x516   : > { %983 = vmatpush.bf16.msrb.mxu1 %v978_v22  ;;  %v1052_v22 = vmul.f32 0.01, %v2342_v30  ;;  %v1055_v30 = vmul.f32 0.01, %v2353_v45 }
 0x51a   : > { %984 = vmatpush.bf16.msrb.mxu1 %v977_v12  ;;  %v1050_v12 = vmul.f32 0.01, %v2334_v24  ;;  %v1053_v24 = vmul.f32 0.01, %v2345_v40 }
 0x51e   : > { %985 = vmatpush.bf16.msrb.mxu1 %v976_v2  ;;  %v1048_v2 = vmul.f32 0.01, %v2326_v13  ;;  %v1051_v13 = vmul.f32 0.01, %v2337_v34 }
 0x522   : > { %986 = vmatpush.bf16.msrb.mxu1 %v975_v52 }
 0x526   : > { %987 = vmatpush.bf16.msrb.mxu1 %v974_v32 }
 0x52a   : > { %988 = vmatpush.bf16.msrb.mxu1 %v973_v8  ;;  %v1046_v8 = vmul.f32 0.01, %v2318_v9  ;;  %v1049_v9 = vmul.f32 0.01, %v2329_v20 }
 0x52d   : > { %989 = vmatmul.bf16.vlgmr.msrb.gmra.mxu1 %v2143_v58 }
 0x53d   : > { %994 = vmatmul.bf16.gmra.mxu1 %v2147_v59 }
 0x54d   : > { %999 = vmatmul.bf16.gmra.mxu1 %v2151_v60 }
 0x55d   : > { %1004 = vmatmul.bf16.gmra.mxu1 %v2155_v61 }
 0x56d   : > { %1009 = vmatmul.bf16.gmra.mxu1 %v2159_v62 }
 0x57d   : > { %1014 = vmatmul.bf16.gmra.mxu1 %v2163_v63 }
 0x58d   : > { %1019 = vmatmul.bf16.gmra.mxu1 %v2167_v0 }
 0x59d   : > { %1024 = vmatmul.bf16.gmra.mxu1 %v2171_v1 }
 0x5aa   : > { %v990_v14 = vpop.f32.mrf.mxu1 }
 0x5ab   : > { %v1030_v16 = vmul.f32 0.989901, %v990_v14  ;;  %v1056_v14 = vmul.f32 0.01, %v2359_v17 }
 0x5ad   : > { %v2393_v32 = vadd.f32 %v1046_v8, %v1030_v16  ;;  %v1057_v8 = vmul.f32 0.01, %v2361_v18 }
 0x5b2   : > { %v992_v52 = vpop.f32.mrf.mxu1 }
 0x5b3   : > { %v1031_v35 = vmul.f32 0.989901, %v992_v52 }
 0x5b5   : > { %v2396_v54 = vadd.f32 %v1047_v10, %v1031_v35 }
 0x5b7   : > { %v1078_v31 = vpack.c.bf16 %v2396_v54, %v2393_v32 }
 0x5ba   : > { %v995_v37 = vpop.f32.mrf.mxu1 }
 0x5bb   : > { %v1032_v55 = vmul.f32 0.989901, %v995_v37 }
 0x5bd   : > { %v2401_v46 = vadd.f32 %v1048_v2, %v1032_v55  ;;  %v1058_v55 = vmul.f32 0.01, %v2367_v39 }
 0x5c2   : > { %v997_v49 = vpop.f32.mrf.mxu1 }
 0x5c3   : > { %v1033_v6 = vmul.f32 0.989901, %v997_v49  ;;  %v1059_v49 = vmul.f32 0.01, %v2369_v51 }
 0x5c5   : > { %v2404_v47 = vadd.f32 %v1049_v9, %v1033_v6 }
 0x5c7   : > { %v1079_v42 = vpack.c.bf16 %v2404_v47, %v2401_v46 }
 0x5ca   : > { %v1000_v53 = vpop.f32.mrf.mxu1 }
 0x5cb   : > { %v1034_v7 = vmul.f32 0.989901, %v1000_v53 }
 0x5cd   : > { %v2409_v56 = vadd.f32 %v1050_v12, %v1034_v7  ;;  %v1060_v12 = vmul.f32 0.01, %v2375_v48 }
 0x5d2   : > { %v1002_v57 = vpop.f32.mrf.mxu1 }
 0x5d3   : > { %v1035_v41 = vmul.f32 0.989901, %v1002_v57 }
 0x5d5   : > { %v2412_v27 = vadd.f32 %v1051_v13, %v1035_v41  ;;  %v1061_v41 = vmul.f32 0.01, %v2377_v50 }
 0x5d7   : > { %v1080_v20 = vpack.c.bf16 %v2412_v27, %v2409_v56 }
 0x5da   : > { %v1005_v38 = vpop.f32.mrf.mxu1 }
 0x5db   : > { %v1036_v33 = vmul.f32 0.989901, %v1005_v38 }
 0x5dd   : > { %v2417_v3 = vadd.f32 %v1052_v22, %v1036_v33  ;;  %v1152_v33 = vmul.f32 0.01, %v2396_v54 }
 0x5e2   : > { %v1007_v44 = vpop.f32.mrf.mxu1 }
 0x5e3   : > { %v1037_v11 = vmul.f32 0.989901, %v1007_v44 }
 0x5e5   : > { %v2420_v23 = vadd.f32 %v1053_v24, %v1037_v11 }
 0x5e7   : > { %v1081_v34 = vpack.c.bf16 %v2420_v23, %v2417_v3 }
 0x5ea   : > { %v1010_v28 = vpop.f32.mrf.mxu1 }
 0x5eb   : > { %v1038_v15 = vmul.f32 0.989901, %v1010_v28 }
 0x5ed   : > { %v2425_v19 = vadd.f32 %v1054_v29, %v1038_v15 }
 0x5f2   : > { %v1012_v21 = vpop.f32.mrf.mxu1 }
 0x5f3   : > { %v1039_v25 = vmul.f32 0.989901, %v1012_v21 }
 0x5f5   : > { %v2428_v43 = vadd.f32 %v1055_v30, %v1039_v25 }
 0x5f7   : > { %v1082_v40 = vpack.c.bf16 %v2428_v43, %v2425_v19 }
 0x5fa   : > { %v1015_v26 = vpop.f32.mrf.mxu1 }
 0x5fb   : > { %v1040_v36 = vmul.f32 0.989901, %v1015_v26 }
 0x5fd   : > { %v2434_v5 = vadd.f32 %v1056_v14, %v1040_v36 }
 0x602   : > { %v1017_v4 = vpop.f32.mrf.mxu1 }
 0x603   : > { %v1041_v16 = vmul.f32 0.989901, %v1017_v4 }
 0x605   : > { %v2436_v52 = vadd.f32 %v1057_v8, %v1041_v16 }
 0x607   : > { %v1083_v45 = vpack.c.bf16 %v2436_v52, %v2434_v5 }
 0x60a   : > { %v1020_v35 = vpop.f32.mrf.mxu1 }
 0x60b   : > { %v1042_v10 = vmul.f32 0.989901, %v1020_v35 }
 0x60d   : > { %v2442_v6 = vadd.f32 %v1058_v55, %v1042_v10 }
 0x612   : > { %v1022_v37 = vpop.f32.mrf.mxu1 }
 0x613   : > { %v1043_v2 = vmul.f32 0.989901, %v1022_v37 }
 0x615   : > { %v2444_v17 = vadd.f32 %v1059_v49, %v1043_v2 }
 0x617   : > { %v1084_v18 = vpack.c.bf16 %v2444_v17, %v2442_v6 }
 0x61a   : > { %v1025_v9 = vpop.f32.mrf.mxu1 }
 0x61b   : > { %v1044_v53 = vmul.f32 0.989901, %v1025_v9 }
 0x61d   : > { %v2450_v13 = vadd.f32 %v1060_v12, %v1044_v53 }
 0x622   : > { %v1027_v7 = vpop.f32.mrf.mxu1 }
 0x623   : > { %v1045_v57 = vmul.f32 0.989901, %v1027_v7 }
 0x625   : > { %v2452_v39 = vadd.f32 %v1061_v41, %v1045_v57 }
 0x627   : > { %v1085_v51 = vpack.c.bf16 %v2452_v39, %v2450_v13 }
 0x629   : > { %1086 = vmatpush.bf16.msrb.mxu2 %v1085_v51 }
 0x62d   : > { %1087 = vmatpush.bf16.msrb.mxu2 %v1084_v18  ;;  %v1159_v18 = vmul.f32 0.01, %v2425_v19 }
 0x631   : > { %1088 = vmatpush.bf16.msrb.mxu2 %v1083_v45  ;;  %v1157_v45 = vmul.f32 0.01, %v2417_v3  ;;  %v1160_v3 = vmul.f32 0.01, %v2428_v43 }
 0x635   : > { %1089 = vmatpush.bf16.msrb.mxu2 %v1082_v40  ;;  %v1155_v40 = vmul.f32 0.01, %v2409_v56  ;;  %v1158_v56 = vmul.f32 0.01, %v2420_v23 }
 0x639   : > { %1090 = vmatpush.bf16.msrb.mxu2 %v1081_v34  ;;  %v1153_v34 = vmul.f32 0.01, %v2401_v46  ;;  %v1156_v46 = vmul.f32 0.01, %v2412_v27 }
 0x63d   : > { %1091 = vmatpush.bf16.msrb.mxu2 %v1080_v20 }
 0x641   : > { %1092 = vmatpush.bf16.msrb.mxu2 %v1079_v42 }
 0x645   : > { %1093 = vmatpush.bf16.msrb.mxu2 %v1078_v31  ;;  %v1151_v31 = vmul.f32 0.01, %v2393_v32  ;;  %v1154_v32 = vmul.f32 0.01, %v2404_v47 }
 0x648   : > { %1094 = vmatmul.bf16.vlgmr.msrb.gmra.mxu2 %v2143_v58 }
 0x658   : > { %1099 = vmatmul.bf16.gmra.mxu2 %v2147_v59 }
 0x668   : > { %1104 = vmatmul.bf16.gmra.mxu2 %v2151_v60 }
 0x678   : > { %1109 = vmatmul.bf16.gmra.mxu2 %v2155_v61 }
 0x688   : > { %1114 = vmatmul.bf16.gmra.mxu2 %v2159_v62 }
 0x698   : > { %1119 = vmatmul.bf16.gmra.mxu2 %v2163_v63 }
 0x6a8   : > { %1124 = vmatmul.bf16.gmra.mxu2 %v2167_v0 }
 0x6b8   : > { %1129 = vmatmul.bf16.gmra.mxu2 %v2171_v1 }
 0x6cb   : > { %v1095_v48 = vpop.f32.mrf.mxu2 }
 0x6cc   : > { %v1135_v50 = vmul.f32 0.989901, %v1095_v48  ;;  %v1161_v48 = vmul.f32 0.01, %v2434_v5 }
 0x6ce   : > { %v2468_v42 = vadd.f32 %v1151_v31, %v1135_v50  ;;  %v1162_v31 = vmul.f32 0.01, %v2436_v52 }
 0x6d3   : > { %v1097_v20 = vpop.f32.mrf.mxu2 }
 0x6d4   : > { %v1136_v38 = vmul.f32 0.989901, %v1097_v20 }
 0x6d6   : > { %v2471_v22 = vadd.f32 %v1152_v33, %v1136_v38 }
 0x6d8   : > { %v1183_v44 = vpack.c.bf16 %v2471_v22, %v2468_v42 }
 0x6db   : > { %v1100_v11 = vpop.f32.mrf.mxu2 }
 0x6dc   : > { %v1137_v24 = vmul.f32 0.989901, %v1100_v11 }
 0x6de   : > { %v2476_v28 = vadd.f32 %v1153_v34, %v1137_v24  ;;  %v1163_v24 = vmul.f32 0.01, %v2442_v6 }
 0x6e3   : > { %v1102_v15 = vpop.f32.mrf.mxu2 }
 0x6e4   : > { %v1138_v29 = vmul.f32 0.989901, %v1102_v15  ;;  %v1164_v15 = vmul.f32 0.01, %v2444_v17 }
 0x6e6   : > { %v2479_v21 = vadd.f32 %v1154_v32, %v1138_v29 }
 0x6e8   : > { %v1184_v54 = vpack.c.bf16 %v2479_v21, %v2476_v28 }
 0x6eb   : > { %v1105_v25 = vpop.f32.mrf.mxu2 }
 0x6ec   : > { %v1139_v30 = vmul.f32 0.989901, %v1105_v25 }
 0x6ee   : > { %v2484_v26 = vadd.f32 %v1155_v40, %v1139_v30  ;;  %v1165_v40 = vmul.f32 0.01, %v2450_v13 }
 0x6f3   : > { %v1107_v36 = vpop.f32.mrf.mxu2 }
 0x6f4   : > { %v1140_v4 = vmul.f32 0.989901, %v1107_v36 }
 0x6f6   : > { %v2487_v14 = vadd.f32 %v1156_v46, %v1140_v4  ;;  %v1166_v4 = vmul.f32 0.01, %v2452_v39 }
 0x6f8   : > { %v1185_v47 = vpack.c.bf16 %v2487_v14, %v2484_v26 }
 0x6fb   : > { %v1110_v16 = vpop.f32.mrf.mxu2 }
 0x6fc   : > { %v1141_v8 = vmul.f32 0.989901, %v1110_v16 }
 0x6fe   : > { %v2492_v35 = vadd.f32 %v1157_v45, %v1141_v8 }
 0x703   : > { %v1112_v10 = vpop.f32.mrf.mxu2 }
 0x704   : > { %v1142_v37 = vmul.f32 0.989901, %v1112_v10 }
 0x706   : > { %v2495_v55 = vadd.f32 %v1158_v56, %v1142_v37  ;;  %v1260_v56 = vmul.f32 0.01, %v2484_v26 }
 0x708   : > { %v1186_v27 = vpack.c.bf16 %v2495_v55, %v2492_v35  ;;  %v1263_v26 = vmul.f32 0.01, %v2495_v55 }
 0x70b   : > { %v1115_v2 = vpop.f32.mrf.mxu2 }
 0x70c   : > { %v1143_v49 = vmul.f32 0.989901, %v1115_v2 }
 0x70e   : > { %v2500_v9 = vadd.f32 %v1159_v18, %v1143_v49 }
 0x713   : > { %v1117_v53 = vpop.f32.mrf.mxu2 }
 0x714   : > { %v1144_v7 = vmul.f32 0.989901, %v1117_v53 }
 0x716   : > { %v2503_v12 = vadd.f32 %v1160_v3, %v1144_v7  ;;  %v1262_v3 = vmul.f32 0.01, %v2492_v35 }
 0x718   : > { %v1187_v23 = vpack.c.bf16 %v2503_v12, %v2500_v9  ;;  %v1265_v35 = vmul.f32 0.01, %v2503_v12 }
 0x71b   : > { %v1120_v57 = vpop.f32.mrf.mxu2 }
 0x71c   : > { %v1145_v41 = vmul.f32 0.989901, %v1120_v57 }
 0x71e   : > { %v2509_v19 = vadd.f32 %v1161_v48, %v1145_v41 }
 0x723   : > { %v1122_v51 = vpop.f32.mrf.mxu2 }
 0x724   : > { %v1146_v50 = vmul.f32 0.989901, %v1122_v51 }
 0x726   : > { %v2511_v20 = vadd.f32 %v1162_v31, %v1146_v50  ;;  %v1264_v31 = vmul.f32 0.01, %v2500_v9 }
 0x728   : > { %v1188_v43 = vpack.c.bf16 %v2511_v20, %v2509_v19 }
 0x72b   : > { %v1125_v38 = vpop.f32.mrf.mxu2 }
 0x72c   : > { %v1147_v33 = vmul.f32 0.989901, %v1125_v38 }
 0x72e   : > { %v2517_v29 = vadd.f32 %v1163_v24, %v1147_v33 }
 0x733   : > { %v1127_v11 = vpop.f32.mrf.mxu2 }
 0x734   : > { %v1148_v34 = vmul.f32 0.989901, %v1127_v11 }
 0x736   : > { %v2519_v5 = vadd.f32 %v1164_v15, %v1148_v34 }
 0x738   : > { %v1189_v52 = vpack.c.bf16 %v2519_v5, %v2517_v29 }
 0x73b   : > { %v1130_v32 = vpop.f32.mrf.mxu2 }
 0x73c   : > { %v1149_v25 = vmul.f32 0.989901, %v1130_v32 }
 0x73e   : > { %v2525_v46 = vadd.f32 %v1165_v40, %v1149_v25  ;;  %v1267_v25 = vmul.f32 0.01, %v2511_v20 }
 0x743   : > { %v1132_v30 = vpop.f32.mrf.mxu2 }
 0x744   : > { %v1150_v36 = vmul.f32 0.989901, %v1132_v30 }
 0x746   : > { %v2527_v6 = vadd.f32 %v1166_v4, %v1150_v36 }
 0x748   : > { %v1190_v17 = vpack.c.bf16 %v2527_v6, %v2525_v46 }
 0x74a   : > { %1191 = vmatpush.bf16.msrb.mxu3 %v1190_v17  ;;  %v1268_v17 = vmul.f32 0.01, %v2517_v29  ;;  %v1271_v29 = vmul.f32 0.01, %v2527_v6  ;;  %v2614_v6 = vld [vmem:[%s2140_s20 + $0x8] sm:$0xff] }
 0x74e   : > { %1192 = vmatpush.bf16.msrb.mxu3 %v1189_v52  ;;  %v1266_v52 = vmul.f32 0.01, %v2509_v19 }
 0x752   : > { %1193 = vmatpush.bf16.msrb.mxu3 %v1188_v43 }
 0x756   : > { %1194 = vmatpush.bf16.msrb.mxu3 %v1187_v23 }
 0x75a   : > { %1195 = vmatpush.bf16.msrb.mxu3 %v1186_v27 }
 0x75e   : > { %1196 = vmatpush.bf16.msrb.mxu3 %v1185_v47 }
 0x762   : > { %1197 = vmatpush.bf16.msrb.mxu3 %v1184_v54 }
 0x766   : > { %1198 = vmatpush.bf16.msrb.mxu3 %v1183_v44  ;;  %v1256_v44 = vmul.f32 0.01, %v2468_v42  ;;  %v1259_v42 = vmul.f32 0.01, %v2479_v21 }
 0x769   : > { %1199 = vmatmul.bf16.vlgmr.msrb.gmra.mxu3 %v2143_v58 }
 0x779   : > { %1204 = vmatmul.bf16.gmra.mxu3 %v2147_v59  ;;  %v1257_v59 = vmul.f32 0.01, %v2471_v22 }
 0x789   : > { %1209 = vmatmul.bf16.gmra.mxu3 %v2151_v60 }
 0x799   : > { %1214 = vmatmul.bf16.gmra.mxu3 %v2155_v61 }
 0x7a9   : > { %1219 = vmatmul.bf16.gmra.mxu3 %v2159_v62 }
 0x7b9   : > { %1224 = vmatmul.bf16.gmra.mxu3 %v2163_v63 }
 0x7c9   : > { %1229 = vmatmul.bf16.gmra.mxu3 %v2167_v0  ;;  %v1258_v0 = vmul.f32 0.01, %v2476_v28  ;;  %v1261_v28 = vmul.f32 0.01, %v2487_v14 }
 0x7d9   : > { %1234 = vmatmul.bf16.gmra.mxu3 %v2171_v1 }
 0x7ec   : > { %v1200_v13 = vpop.f32.mrf.mxu3 }
 0x7ed   : > { %v1240_v39 = vmul.f32 0.989901, %v1200_v13 }
 0x7ef   : > { %v2543_v54 = vadd.f32 %v1256_v44, %v1240_v39  ;;  %v1269_v39 = vmul.f32 0.01, %v2519_v5 }
 0x7f4   : > { %v1202_v58 = vpop.f32.mrf.mxu3 }
 0x7f5   : > { %v1241_v60 = vmul.f32 0.989901, %v1202_v58 }
 0x7f7   : > { %v2546_v47 = vadd.f32 %v1257_v59, %v1241_v60 }
 0x7f9   : > { %v1288_v61 = vpack.c.bf16 %v2546_v47, %v2543_v54 }
 0x7fc   : > { %v1205_v62 = vpop.f32.mrf.mxu3 }
 0x7fd   : > { %v1242_v63 = vmul.f32 0.989901, %v1205_v62  ;;  %v1270_v62 = vmul.f32 0.01, %v2525_v46  ;;  %v2610_v46 = vld [vmem:[%s2140_s20] sm:$0xff] }
 0x7ff   : > { %v2551_v1 = vadd.f32 %v1258_v0, %v1242_v63 }
 0x804   : > { %v1207_v16 = vpop.f32.mrf.mxu3 }
 0x805   : > { %v1243_v8 = vmul.f32 0.989901, %v1207_v16 }
 0x807   : > { %v2554_v45 = vadd.f32 %v1259_v42, %v1243_v8  ;;  %v2618_v42 = vld [vmem:[%s2140_s20 + $0x10] sm:$0xff]  ;;  %v2622_v8 = vld [vmem:[%s2140_s20 + $0x18] sm:$0xff] }
 0x809   : > { %v1289_v22 = vpack.c.bf16 %v2554_v45, %v2551_v1 }
 0x80c   : > { %v1210_v10 = vpop.f32.mrf.mxu3 }
 0x80d   : > { %v1244_v37 = vmul.f32 0.989901, %v1210_v10  ;;  %v2634_v10 = vld [vmem:[%s2140_s20 + $0x30] sm:$0xff] }
 0x80f   : > { %v2559_v27 = vadd.f32 %v1260_v56, %v1244_v37  ;;  %v2638_v37 = vld [vmem:[%s2140_s20 + $0x38] sm:$0xff] }
 0x814   : > { %v1212_v2 = vpop.f32.mrf.mxu3 }
 0x815   : > { %v1245_v49 = vmul.f32 0.989901, %v1212_v2 }
 0x817   : > { %v2562_v18 = vadd.f32 %v1261_v28, %v1245_v49  ;;  %v1361_v28 = vmul.f32 0.01, %v2543_v54  ;;  %v1364_v54 = vmul.f32 0.01, %v2554_v45 }
 0x819   : > { %v1290_v21 = vpack.c.bf16 %v2562_v18, %v2559_v27 }
 0x81c   : > { %v1215_v53 = vpop.f32.mrf.mxu3 }
 0x81d   : > { %v1246_v7 = vmul.f32 0.989901, %v1215_v53 }
 0x81f   : > { %v2567_v23 = vadd.f32 %v1262_v3, %v1246_v7  ;;  %v1362_v7 = vmul.f32 0.01, %v2546_v47 }
 0x824   : > { %v1217_v57 = vpop.f32.mrf.mxu3 }
 0x825   : > { %v1247_v41 = vmul.f32 0.989901, %v1217_v57 }
 0x827   : > { %v2570_v51 = vadd.f32 %v1263_v26, %v1247_v41 }
 0x829   : > { %v1291_v14 = vpack.c.bf16 %v2570_v51, %v2567_v23 }
 0x82c   : > { %v1220_v48 = vpop.f32.mrf.mxu3 }
 0x82d   : > { %v1248_v50 = vmul.f32 0.989901, %v1220_v48 }
 0x82f   : > { %v2575_v43 = vadd.f32 %v1264_v31, %v1248_v50 }
 0x834   : > { %v1222_v38 = vpop.f32.mrf.mxu3 }
 0x835   : > { %v1249_v33 = vmul.f32 0.989901, %v1222_v38 }
 0x837   : > { %v2578_v11 = vadd.f32 %v1265_v35, %v1249_v33 }
 0x839   : > { %v1292_v55 = vpack.c.bf16 %v2578_v11, %v2575_v43 }
 0x83c   : > { %v1225_v24 = vpop.f32.mrf.mxu3 }
 0x83d   : > { %v1250_v34 = vmul.f32 0.989901, %v1225_v24 }
 0x83f   : > { %v2584_v9 = vadd.f32 %v1266_v52, %v1250_v34 }
 0x844   : > { %v1227_v15 = vpop.f32.mrf.mxu3 }
 0x845   : > { %v1251_v32 = vmul.f32 0.989901, %v1227_v15 }
 0x847   : > { %v2586_v30 = vadd.f32 %v1267_v25, %v1251_v32 }
 0x849   : > { %v1293_v12 = vpack.c.bf16 %v2586_v30, %v2584_v9 }
 0x84c   : > { %v1230_v40 = vpop.f32.mrf.mxu3 }
 0x84d   : > { %v1252_v36 = vmul.f32 0.989901, %v1230_v40 }
 0x84f   : > { %v2592_v44 = vadd.f32 %v1268_v17, %v1252_v36 }
 0x854   : > { %v1232_v4 = vpop.f32.mrf.mxu3 }
 0x855   : > { %v1253_v13 = vmul.f32 0.989901, %v1232_v4 }
 0x857   : > { %v2594_v19 = vadd.f32 %v1269_v39, %v1253_v13 }
 0x859   : > { %v1294_v20 = vpack.c.bf16 %v2594_v19, %v2592_v44 }
 0x85c   : > { %v1235_v58 = vpop.f32.mrf.mxu3 }
 0x85d   : > { %v1254_v59 = vmul.f32 0.989901, %v1235_v58 }
 0x85f   : > { %v2600_v0 = vadd.f32 %v1270_v62, %v1254_v59 }
 0x864   : > { %v1237_v60 = vpop.f32.mrf.mxu3 }
 0x865   : > { %v1255_v63 = vmul.f32 0.989901, %v1237_v60 }
 0x867   : > { %v2602_v5 = vadd.f32 %v1271_v29, %v1255_v63 }
 0x869   : > { %v1295_v16 = vpack.c.bf16 %v2602_v5, %v2600_v0 }
 0x86b   : > { %1296 = vmatpush.bf16.msra.mxu0 %v1295_v16 }
 0x86f   : > { %1297 = vmatpush.bf16.msra.mxu0 %v1294_v20  ;;  %v1369_v20 = vmul.f32 0.01, %v2575_v43 }
 0x873   : > { %1298 = vmatpush.bf16.msra.mxu0 %v1293_v12  ;;  %v1367_v12 = vmul.f32 0.01, %v2567_v23  ;;  %v1370_v23 = vmul.f32 0.01, %v2578_v11 }
 0x877   : > { %1299 = vmatpush.bf16.msra.mxu0 %v1292_v55  ;;  %v1365_v55 = vmul.f32 0.01, %v2559_v27  ;;  %v1368_v27 = vmul.f32 0.01, %v2570_v51 }
 0x87b   : > { %1300 = vmatpush.bf16.msra.mxu0 %v1291_v14  ;;  %v1363_v14 = vmul.f32 0.01, %v2551_v1  ;;  %v1366_v1 = vmul.f32 0.01, %v2562_v18 }
 0x87f   : > { %1301 = vmatpush.bf16.msra.mxu0 %v1290_v21 }
 0x883   : > { %1302 = vmatpush.bf16.msra.mxu0 %v1289_v22  ;;  %v2626_v22 = vld [vmem:[%s2140_s20 + $0x20] sm:$0xff] }
 0x887   : > { %1303 = vmatpush.bf16.msra.mxu0 %v1288_v61  ;;  %v2630_v61 = vld [vmem:[%s2140_s20 + $0x28] sm:$0xff] }
 0x88a   : > { %1304 = vmatmul.bf16.vlgmr.msra.gmra.mxu0 %v2610_v46 }
 0x89a   : > { %1309 = vmatmul.bf16.gmra.mxu0 %v2614_v6 }
 0x8aa   : > { %1314 = vmatmul.bf16.gmra.mxu0 %v2618_v42 }
 0x8ba   : > { %1319 = vmatmul.bf16.gmra.mxu0 %v2622_v8 }
 0x8ca   : > { %1324 = vmatmul.bf16.gmra.mxu0 %v2626_v22 }
 0x8da   : > { %1329 = vmatmul.bf16.gmra.mxu0 %v2630_v61 }
 0x8ea   : > { %1334 = vmatmul.bf16.gmra.mxu0 %v2634_v10 }
 0x8fa   : > { %1339 = vmatmul.bf16.gmra.mxu0 %v2638_v37 }
 0x907   : > { %v1305_v56 = vpop.f32.mrf.mxu0 }
 0x908   : > { %v1345_v2 = vmul.f32 0.989901, %v1305_v56  ;;  %v1371_v56 = vmul.f32 0.01, %v2584_v9 }
 0x90a   : > { %v2642_v49 = vadd.f32 %v1361_v28, %v1345_v2  ;;  %v1372_v28 = vmul.f32 0.01, %v2586_v30 }
 0x90f   : > { %v1307_v21 = vpop.f32.mrf.mxu0 }
 0x910   : > { %v1346_v53 = vmul.f32 0.989901, %v1307_v21 }
 0x912   : > { %v2645_v3 = vadd.f32 %v1362_v7, %v1346_v53 }
 0x914   : > { %v1393_v57 = vpack.c.bf16 %v2645_v3, %v2642_v49 }
 0x917   : > { %v1310_v26 = vpop.f32.mrf.mxu0 }
 0x918   : > { %v1347_v41 = vmul.f32 0.989901, %v1310_v26 }
 0x91a   : > { %v2650_v48 = vadd.f32 %v1363_v14, %v1347_v41  ;;  %v1373_v41 = vmul.f32 0.01, %v2592_v44 }
 0x91f   : > { %v1312_v50 = vpop.f32.mrf.mxu0 }
 0x920   : > { %v1348_v31 = vmul.f32 0.989901, %v1312_v50  ;;  %v1374_v50 = vmul.f32 0.01, %v2594_v19 }
 0x922   : > { %v2653_v38 = vadd.f32 %v1364_v54, %v1348_v31 }
 0x924   : > { %v1394_v47 = vpack.c.bf16 %v2653_v38, %v2650_v48 }
 0x927   : > { %v1315_v33 = vpop.f32.mrf.mxu0 }
 0x928   : > { %v1349_v35 = vmul.f32 0.989901, %v1315_v33 }
 0x92a   : > { %v2658_v24 = vadd.f32 %v1365_v55, %v1349_v35  ;;  %v1375_v55 = vmul.f32 0.01, %v2600_v0 }
 0x92f   : > { %v1317_v34 = vpop.f32.mrf.mxu0 }
 0x930   : > { %v1350_v15 = vmul.f32 0.989901, %v1317_v34 }
 0x932   : > { %v2661_v52 = vadd.f32 %v1366_v1, %v1350_v15  ;;  %v1376_v15 = vmul.f32 0.01, %v2602_v5 }
 0x934   : > { %v1395_v45 = vpack.c.bf16 %v2661_v52, %v2658_v24 }
 0x937   : > { %v1320_v32 = vpop.f32.mrf.mxu0 }
 0x938   : > { %v1351_v25 = vmul.f32 0.989901, %v1320_v32 }
 0x93a   : > { %v2666_v40 = vadd.f32 %v1367_v12, %v1351_v25  ;;  %v1467_v25 = vmul.f32 0.01, %v2645_v3 }
 0x93f   : > { %v1322_v36 = vpop.f32.mrf.mxu0 }
 0x940   : > { %v1352_v4 = vmul.f32 0.989901, %v1322_v36 }
 0x942   : > { %v2669_v17 = vadd.f32 %v1368_v27, %v1352_v4 }
 0x944   : > { %v1396_v18 = vpack.c.bf16 %v2669_v17, %v2666_v40 }
 0x947   : > { %v1325_v13 = vpop.f32.mrf.mxu0 }
 0x948   : > { %v1353_v39 = vmul.f32 0.989901, %v1325_v13 }
 0x94a   : > { %v2674_v58 = vadd.f32 %v1369_v20, %v1353_v39 }
 0x94f   : > { %v1327_v59 = vpop.f32.mrf.mxu0 }
 0x950   : > { %v1354_v60 = vmul.f32 0.989901, %v1327_v59 }
 0x952   : > { %v2677_v62 = vadd.f32 %v1370_v23, %v1354_v60 }
 0x954   : > { %v1397_v51 = vpack.c.bf16 %v2677_v62, %v2674_v58 }
 0x957   : > { %v1330_v63 = vpop.f32.mrf.mxu0 }
 0x958   : > { %v1355_v29 = vmul.f32 0.989901, %v1330_v63 }
 0x95a   : > { %v2683_v43 = vadd.f32 %v1371_v56, %v1355_v29 }
 0x95f   : > { %v1332_v16 = vpop.f32.mrf.mxu0 }
 0x960   : > { %v1356_v2 = vmul.f32 0.989901, %v1332_v16 }
 0x962   : > { %v2685_v21 = vadd.f32 %v1372_v28, %v1356_v2 }
 0x964   : > { %v1398_v11 = vpack.c.bf16 %v2685_v21, %v2683_v43 }
 0x967   : > { %v1335_v53 = vpop.f32.mrf.mxu0 }
 0x968   : > { %v1357_v7 = vmul.f32 0.989901, %v1335_v53 }
 0x96a   : > { %v2691_v31 = vadd.f32 %v1373_v41, %v1357_v7 }
 0x96f   : > { %v1337_v26 = vpop.f32.mrf.mxu0 }
 0x970   : > { %v1358_v14 = vmul.f32 0.989901, %v1337_v26 }
 0x972   : > { %v2693_v9 = vadd.f32 %v1374_v50, %v1358_v14 }
 0x974   : > { %v1399_v30 = vpack.c.bf16 %v2693_v9, %v2691_v31 }
 0x977   : > { %v1340_v54 = vpop.f32.mrf.mxu0 }
 0x978   : > { %v1359_v33 = vmul.f32 0.989901, %v1340_v54 }
 0x97a   : > { %v2699_v1 = vadd.f32 %v1375_v55, %v1359_v33 }
 0x97f   : > { %v1342_v35 = vpop.f32.mrf.mxu0 }
 0x980   : > { %v1360_v34 = vmul.f32 0.989901, %v1342_v35 }
 0x982   : > { %v2701_v44 = vadd.f32 %v1376_v15, %v1360_v34 }
 0x984   : > { %v1400_v19 = vpack.c.bf16 %v2701_v44, %v2699_v1 }
 0x986   : > { %1401 = vmatpush.bf16.msra.mxu1 %v1400_v19 }
 0x98a   : > { %1402 = vmatpush.bf16.msra.mxu1 %v1399_v30  ;;  %v1474_v30 = vmul.f32 0.01, %v2674_v58 }
 0x98e   : > { %1403 = vmatpush.bf16.msra.mxu1 %v1398_v11  ;;  %v1472_v11 = vmul.f32 0.01, %v2666_v40  ;;  %v1475_v40 = vmul.f32 0.01, %v2677_v62 }
 0x992   : > { %1404 = vmatpush.bf16.msra.mxu1 %v1397_v51  ;;  %v1470_v51 = vmul.f32 0.01, %v2658_v24  ;;  %v1473_v24 = vmul.f32 0.01, %v2669_v17 }
 0x996   : > { %1405 = vmatpush.bf16.msra.mxu1 %v1396_v18  ;;  %v1468_v18 = vmul.f32 0.01, %v2650_v48  ;;  %v1471_v48 = vmul.f32 0.01, %v2661_v52 }
 0x99a   : > { %1406 = vmatpush.bf16.msra.mxu1 %v1395_v45 }
 0x99e   : > { %1407 = vmatpush.bf16.msra.mxu1 %v1394_v47 }
 0x9a2   : > { %1408 = vmatpush.bf16.msra.mxu1 %v1393_v57  ;;  %v1466_v57 = vmul.f32 0.01, %v2642_v49  ;;  %v1469_v49 = vmul.f32 0.01, %v2653_v38 }
 0x9a5   : > { %1409 = vmatmul.bf16.vlgmr.msra.gmra.mxu1 %v2610_v46 }
 0x9b5   : > { %1414 = vmatmul.bf16.gmra.mxu1 %v2614_v6 }
 0x9c5   : > { %1419 = vmatmul.bf16.gmra.mxu1 %v2618_v42 }
 0x9d5   : > { %1424 = vmatmul.bf16.gmra.mxu1 %v2622_v8 }
 0x9e5   : > { %1429 = vmatmul.bf16.gmra.mxu1 %v2626_v22 }
 0x9f5   : > { %1434 = vmatmul.bf16.gmra.mxu1 %v2630_v61 }
 0xa05   : > { %1439 = vmatmul.bf16.gmra.mxu1 %v2634_v10 }
 0xa15   : > { %1444 = vmatmul.bf16.gmra.mxu1 %v2638_v37 }
 0xa22   : > { %v1410_v0 = vpop.f32.mrf.mxu1 }
 0xa23   : > { %v1450_v5 = vmul.f32 0.989901, %v1410_v0  ;;  %v1476_v0 = vmul.f32 0.01, %v2683_v43 }
 0xa25   : > { %v2717_v47 = vadd.f32 %v1466_v57, %v1450_v5  ;;  %v1477_v57 = vmul.f32 0.01, %v2685_v21 }
 0xa2a   : > { %v1412_v45 = vpop.f32.mrf.mxu1 }
 0xa2b   : > { %v1451_v32 = vmul.f32 0.989901, %v1412_v45 }
 0xa2d   : > { %v2720_v12 = vadd.f32 %v1467_v25, %v1451_v32 }
 0xa2f   : > { %v1498_v36 = vpack.c.bf16 %v2720_v12, %v2717_v47 }
 0xa32   : > { %v1415_v4 = vpop.f32.mrf.mxu1 }
 0xa33   : > { %v1452_v27 = vmul.f32 0.989901, %v1415_v4 }
 0xa35   : > { %v2725_v13 = vadd.f32 %v1468_v18, %v1452_v27  ;;  %v1478_v27 = vmul.f32 0.01, %v2691_v31 }
 0xa3a   : > { %v1417_v39 = vpop.f32.mrf.mxu1 }
 0xa3b   : > { %v1453_v20 = vmul.f32 0.989901, %v1417_v39  ;;  %v1479_v39 = vmul.f32 0.01, %v2693_v9 }
 0xa3d   : > { %v2728_v59 = vadd.f32 %v1469_v49, %v1453_v20 }
 0xa3f   : > { %v1499_v3 = vpack.c.bf16 %v2728_v59, %v2725_v13 }
 0xa42   : > { %v1420_v60 = vpop.f32.mrf.mxu1 }
 0xa43   : > { %v1454_v23 = vmul.f32 0.989901, %v1420_v60 }
 0xa45   : > { %v2733_v63 = vadd.f32 %v1470_v51, %v1454_v23  ;;  %v1480_v51 = vmul.f32 0.01, %v2699_v1 }
 0xa4a   : > { %v1422_v29 = vpop.f32.mrf.mxu1 }
 0xa4b   : > { %v1455_v16 = vmul.f32 0.989901, %v1422_v29 }
 0xa4d   : > { %v2736_v56 = vadd.f32 %v1471_v48, %v1455_v16  ;;  %v1481_v16 = vmul.f32 0.01, %v2701_v44 }
 0xa4f   : > { %v1500_v38 = vpack.c.bf16 %v2736_v56, %v2733_v63 }
 0xa52   : > { %v1425_v2 = vpop.f32.mrf.mxu1 }
 0xa53   : > { %v1456_v28 = vmul.f32 0.989901, %v1425_v2 }
 0xa55   : > { %v2741_v53 = vadd.f32 %v1472_v11, %v1456_v28  ;;  %v1572_v28 = vmul.f32 0.01, %v2720_v12 }
 0xa5a   : > { %v1427_v7 = vpop.f32.mrf.mxu1 }
 0xa5b   : > { %v1457_v26 = vmul.f32 0.989901, %v1427_v7 }
 0xa5d   : > { %v2744_v41 = vadd.f32 %v1473_v24, %v1457_v26 }
 0xa5f   : > { %v1501_v52 = vpack.c.bf16 %v2744_v41, %v2741_v53 }
 0xa62   : > { %v1430_v14 = vpop.f32.mrf.mxu1 }
 0xa63   : > { %v1458_v50 = vmul.f32 0.989901, %v1430_v14 }
 0xa65   : > { %v2749_v54 = vadd.f32 %v1474_v30, %v1458_v50 }
 0xa6a   : > { %v1432_v33 = vpop.f32.mrf.mxu1 }
 0xa6b   : > { %v1459_v35 = vmul.f32 0.989901, %v1432_v33 }
 0xa6d   : > { %v2752_v55 = vadd.f32 %v1475_v40, %v1459_v35 }
 0xa6f   : > { %v1502_v17 = vpack.c.bf16 %v2752_v55, %v2749_v54 }
 0xa72   : > { %v1435_v34 = vpop.f32.mrf.mxu1 }
 0xa73   : > { %v1460_v15 = vmul.f32 0.989901, %v1435_v34 }
 0xa75   : > { %v2758_v58 = vadd.f32 %v1476_v0, %v1460_v15 }
 0xa7a   : > { %v1437_v19 = vpop.f32.mrf.mxu1 }
 0xa7b   : > { %v1461_v5 = vmul.f32 0.989901, %v1437_v19 }
 0xa7d   : > { %v2760_v45 = vadd.f32 %v1477_v57, %v1461_v5 }
 0xa7f   : > { %v1503_v62 = vpack.c.bf16 %v2760_v45, %v2758_v58 }
 0xa82   : > { %v1440_v32 = vpop.f32.mrf.mxu1 }
 0xa83   : > { %v1462_v25 = vmul.f32 0.989901, %v1440_v32 }
 0xa85   : > { %v2766_v20 = vadd.f32 %v1478_v27, %v1462_v25 }
 0xa8a   : > { %v1442_v4 = vpop.f32.mrf.mxu1 }
 0xa8b   : > { %v1463_v18 = vmul.f32 0.989901, %v1442_v4 }
 0xa8d   : > { %v2768_v43 = vadd.f32 %v1479_v39, %v1463_v18 }
 0xa8f   : > { %v1504_v21 = vpack.c.bf16 %v2768_v43, %v2766_v20 }
 0xa92   : > { %v1445_v49 = vpop.f32.mrf.mxu1 }
 0xa93   : > { %v1464_v60 = vmul.f32 0.989901, %v1445_v49 }
 0xa95   : > { %v2774_v48 = vadd.f32 %v1480_v51, %v1464_v60 }
 0xa9a   : > { %v1447_v23 = vpop.f32.mrf.mxu1 }
 0xa9b   : > { %v1465_v29 = vmul.f32 0.989901, %v1447_v23 }
 0xa9d   : > { %v2776_v31 = vadd.f32 %v1481_v16, %v1465_v29 }
 0xa9f   : > { %v1505_v9 = vpack.c.bf16 %v2776_v31, %v2774_v48 }
 0xaa1   : > { %1506 = vmatpush.bf16.msra.mxu2 %v1505_v9 }
 0xaa5   : > { %1507 = vmatpush.bf16.msra.mxu2 %v1504_v21  ;;  %v1579_v21 = vmul.f32 0.01, %v2749_v54 }
 0xaa9   : > { %1508 = vmatpush.bf16.msra.mxu2 %v1503_v62  ;;  %v1577_v62 = vmul.f32 0.01, %v2741_v53  ;;  %v1580_v53 = vmul.f32 0.01, %v2752_v55 }
 0xaad   : > { %1509 = vmatpush.bf16.msra.mxu2 %v1502_v17  ;;  %v1575_v17 = vmul.f32 0.01, %v2733_v63  ;;  %v1578_v63 = vmul.f32 0.01, %v2744_v41 }
 0xab1   : > { %1510 = vmatpush.bf16.msra.mxu2 %v1501_v52  ;;  %v1573_v52 = vmul.f32 0.01, %v2725_v13  ;;  %v1576_v13 = vmul.f32 0.01, %v2736_v56 }
 0xab5   : > { %1511 = vmatpush.bf16.msra.mxu2 %v1500_v38 }
 0xab9   : > { %1512 = vmatpush.bf16.msra.mxu2 %v1499_v3 }
 0xabd   : > { %1513 = vmatpush.bf16.msra.mxu2 %v1498_v36  ;;  %v1571_v36 = vmul.f32 0.01, %v2717_v47  ;;  %v1574_v47 = vmul.f32 0.01, %v2728_v59 }
 0xac0   : > { %1514 = vmatmul.bf16.vlgmr.msra.gmra.mxu2 %v2610_v46 }
 0xad0   : > { %1519 = vmatmul.bf16.gmra.mxu2 %v2614_v6 }
 0xae0   : > { %1524 = vmatmul.bf16.gmra.mxu2 %v2618_v42 }
 0xaf0   : > { %1529 = vmatmul.bf16.gmra.mxu2 %v2622_v8 }
 0xb00   : > { %1534 = vmatmul.bf16.gmra.mxu2 %v2626_v22 }
 0xb10   : > { %1539 = vmatmul.bf16.gmra.mxu2 %v2630_v61 }
 0xb20   : > { %1544 = vmatmul.bf16.gmra.mxu2 %v2634_v10 }
 0xb30   : > { %1549 = vmatmul.bf16.gmra.mxu2 %v2638_v37 }
 0xb43   : > { %v1515_v1 = vpop.f32.mrf.mxu2 }
 0xb44   : > { %v1555_v44 = vmul.f32 0.989901, %v1515_v1  ;;  %v1581_v1 = vmul.f32 0.01, %v2758_v58 }
 0xb46   : > { %v2792_v3 = vadd.f32 %v1571_v36, %v1555_v44  ;;  %v1582_v36 = vmul.f32 0.01, %v2760_v45 }
 0xb4b   : > { %v1517_v38 = vpop.f32.mrf.mxu2 }
 0xb4c   : > { %v1556_v2 = vmul.f32 0.989901, %v1517_v38 }
 0xb4e   : > { %v2795_v11 = vadd.f32 %v1572_v28, %v1556_v2 }
 0xb50   : > { %v1603_v7 = vpack.c.bf16 %v2795_v11, %v2792_v3 }
 0xb53   : > { %v1520_v26 = vpop.f32.mrf.mxu2 }
 0xb54   : > { %v1557_v24 = vmul.f32 0.989901, %v1520_v26 }
 0xb56   : > { %v2800_v14 = vadd.f32 %v1573_v52, %v1557_v24  ;;  %v1583_v24 = vmul.f32 0.01, %v2766_v20 }
 0xb5b   : > { %v1522_v50 = vpop.f32.mrf.mxu2 }
 0xb5c   : > { %v1558_v30 = vmul.f32 0.989901, %v1522_v50  ;;  %v1584_v50 = vmul.f32 0.01, %v2768_v43 }
 0xb5e   : > { %v2803_v33 = vadd.f32 %v1574_v47, %v1558_v30 }
 0xb60   : > { %v1604_v12 = vpack.c.bf16 %v2803_v33, %v2800_v14 }
 0xb63   : > { %v1525_v35 = vpop.f32.mrf.mxu2 }
 0xb64   : > { %v1559_v40 = vmul.f32 0.989901, %v1525_v35 }
 0xb66   : > { %v2808_v34 = vadd.f32 %v1575_v17, %v1559_v40  ;;  %v1585_v17 = vmul.f32 0.01, %v2774_v48 }
 0xb6b   : > { %v1527_v15 = vpop.f32.mrf.mxu2 }
 0xb6c   : > { %v1560_v19 = vmul.f32 0.989901, %v1527_v15 }
 0xb6e   : > { %v2811_v0 = vadd.f32 %v1576_v13, %v1560_v19  ;;  %v1586_v19 = vmul.f32 0.01, %v2776_v31 }
 0xb70   : > { %v1605_v59 = vpack.c.bf16 %v2811_v0, %v2808_v34 }
 0xb73   : > { %v1530_v5 = vpop.f32.mrf.mxu2 }
 0xb74   : > { %v1561_v57 = vmul.f32 0.989901, %v1530_v5  ;;  %v1679_v5 = vmul.f32 0.01, %v2803_v33 }
 0xb76   : > { %v2816_v32 = vadd.f32 %v1577_v62, %v1561_v57 }
 0xb78   : > { %v1682_v33 = vmul.f32 0.01, %v2816_v32 }
 0xb7b   : > { %v1532_v25 = vpop.f32.mrf.mxu2 }
 0xb7c   : > { %v1562_v4 = vmul.f32 0.989901, %v1532_v25 }
 0xb7e   : > { %v2819_v27 = vadd.f32 %v1578_v63, %v1562_v4 }
 0xb80   : > { %v1606_v56 = vpack.c.bf16 %v2819_v27, %v2816_v32 }
 0xb83   : > { %v1535_v18 = vpop.f32.mrf.mxu2 }
 0xb84   : > { %v1563_v39 = vmul.f32 0.989901, %v1535_v18 }
 0xb86   : > { %v2824_v49 = vadd.f32 %v1579_v21, %v1563_v39 }
 0xb8b   : > { %v1537_v60 = vpop.f32.mrf.mxu2 }
 0xb8c   : > { %v1564_v23 = vmul.f32 0.989901, %v1537_v60 }
 0xb8e   : > { %v2827_v51 = vadd.f32 %v1580_v53, %v1564_v23 }
 0xb90   : > { %v1607_v41 = vpack.c.bf16 %v2827_v51, %v2824_v49  ;;  %v1685_v32 = vmul.f32 0.01, %v2827_v51 }
 0xb93   : > { %v1540_v29 = vpop.f32.mrf.mxu2 }
 0xb94   : > { %v1565_v16 = vmul.f32 0.989901, %v1540_v29 }
 0xb96   : > { %v2833_v54 = vadd.f32 %v1581_v1, %v1565_v16 }
 0xb9b   : > { %v1542_v9 = vpop.f32.mrf.mxu2 }
 0xb9c   : > { %v1566_v44 = vmul.f32 0.989901, %v1542_v9 }
 0xb9e   : > { %v2835_v38 = vadd.f32 %v1582_v36, %v1566_v44 }
 0xba0   : > { %v1608_v55 = vpack.c.bf16 %v2835_v38, %v2833_v54 }
 0xba3   : > { %v1545_v2 = vpop.f32.mrf.mxu2 }
 0xba4   : > { %v1567_v28 = vmul.f32 0.989901, %v1545_v2 }
 0xba6   : > { %v2841_v30 = vadd.f32 %v1583_v24, %v1567_v28 }
 0xba8   : > { %v1688_v51 = vmul.f32 0.01, %v2841_v30 }
 0xbab   : > { %v1547_v26 = vpop.f32.mrf.mxu2 }
 0xbac   : > { %v1568_v52 = vmul.f32 0.989901, %v1547_v26 }
 0xbae   : > { %v2843_v58 = vadd.f32 %v1584_v50, %v1568_v52 }
 0xbb0   : > { %v1609_v45 = vpack.c.bf16 %v2843_v58, %v2841_v30 }
 0xbb3   : > { %v1550_v47 = vpop.f32.mrf.mxu2 }
 0xbb4   : > { %v1569_v35 = vmul.f32 0.989901, %v1550_v47 }
 0xbb6   : > { %v2849_v13 = vadd.f32 %v1585_v17, %v1569_v35 }
 0xbbb   : > { %v1552_v40 = vpop.f32.mrf.mxu2 }
 0xbbc   : > { %v1570_v15 = vmul.f32 0.989901, %v1552_v40 }
 0xbbe   : > { %v2851_v20 = vadd.f32 %v1586_v19, %v1570_v15 }
 0xbc0   : > { %v1610_v43 = vpack.c.bf16 %v2851_v20, %v2849_v13 }
 0xbc2   : > { %1611 = vmatpush.bf16.msra.mxu3 %v1610_v43 }
 0xbc6   : > { %1612 = vmatpush.bf16.msra.mxu3 %v1609_v45 }
 0xbca   : > { %1613 = vmatpush.bf16.msra.mxu3 %v1608_v55 }
 0xbce   : > { %1614 = vmatpush.bf16.msra.mxu3 %v1607_v41 }
 0xbd2   : > { %1615 = vmatpush.bf16.msra.mxu3 %v1606_v56 }
 0xbd6   : > { %1616 = vmatpush.bf16.msra.mxu3 %v1605_v59 }
 0xbda   : > { %1617 = vmatpush.bf16.msra.mxu3 %v1604_v12 }
 0xbde   : > { %1618 = vmatpush.bf16.msra.mxu3 %v1603_v7  ;;  %v1676_v7 = vmul.f32 0.01, %v2792_v3 }
 0xbe1   : > { %1619 = vmatmul.bf16.vlgmr.msra.gmra.mxu3 %v2610_v46 }
 0xbf1   : > { %1624 = vmatmul.bf16.gmra.mxu3 %v2614_v6 }
 0xc01   : > { %1629 = vmatmul.bf16.gmra.mxu3 %v2618_v42 }
 0xc11   : > { %1634 = vmatmul.bf16.gmra.mxu3 %v2622_v8  ;;  %v1677_v8 = vmul.f32 0.01, %v2795_v11  ;;  %v1680_v11 = vmul.f32 0.01, %v2808_v34  ;;  %v1683_v34 = vmul.f32 0.01, %v2819_v27 }
 0xc12   : > { %v1686_v27 = vmul.f32 0.01, %v2833_v54  ;;  %v1689_v54 = vmul.f32 0.01, %v2843_v58 }
 0xc21   : > { %1639 = vmatmul.bf16.gmra.mxu3 %v2626_v22 }
 0xc31   : > { %1644 = vmatmul.bf16.gmra.mxu3 %v2630_v61 }
 0xc41   : > { %1649 = vmatmul.bf16.gmra.mxu3 %v2634_v10 }
 0xc51   : > { %1654 = vmatmul.bf16.gmra.mxu3 %v2638_v37  ;;  %v1678_v37 = vmul.f32 0.01, %v2800_v14  ;;  %v1681_v14 = vmul.f32 0.01, %v2811_v0  ;;  %v1684_v0 = vmul.f32 0.01, %v2824_v49 }
 0xc52   : > { %v1687_v49 = vmul.f32 0.01, %v2835_v38  ;;  %v1690_v38 = vmul.f32 0.01, %v2849_v13 }
 0xc64   : > { %v1620_v48 = vpop.f32.mrf.mxu3 }
 0xc65   : > { %v1660_v31 = vmul.f32 0.989901, %v1620_v48 }
 0xc67   : > { %v1692_v46 = vadd.f32 %v1676_v7, %v1660_v31  ;;  %v1691_v7 = vmul.f32 0.01, %v2851_v20 }
 0xc69   : > { %1708 = vst [vmem:[%s2871_s25] sm:$0xff] %v1692_v46 }
 0xc6c   : > { %v1622_v6 = vpop.f32.mrf.mxu3 }
 0xc6d   : > { %v1661_v42 = vmul.f32 0.989901, %v1622_v6 }
 0xc6f   : > { %v1693_v22 = vadd.f32 %v1677_v8, %v1661_v42 }
 0xc71   : > { %1709 = vst [vmem:[%s2871_s25 + $0x8] sm:$0xff] %v1693_v22 }
 0xc74   : > { %v1625_v61 = vpop.f32.mrf.mxu3 }
 0xc75   : > { %v1662_v10 = vmul.f32 0.989901, %v1625_v61 }
 0xc77   : > { %v1694_v3 = vadd.f32 %v1678_v37, %v1662_v10 }
 0xc79   : > { %1710 = vst [vmem:[%s2871_s25 + $0x10] sm:$0xff] %v1694_v3 }
 0xc7c   : > { %v1627_v12 = vpop.f32.mrf.mxu3 }
 0xc7d   : > { %v1663_v59 = vmul.f32 0.989901, %v1627_v12 }
 0xc7f   : > { %v1695_v57 = vadd.f32 %v1679_v5, %v1663_v59 }
 0xc81   : > { %1711 = vst [vmem:[%s2871_s25 + $0x18] sm:$0xff] %v1695_v57 }
 0xc84   : > { %v1630_v62 = vpop.f32.mrf.mxu3 }
 0xc85   : > { %v1664_v25 = vmul.f32 0.989901, %v1630_v62 }
 0xc87   : > { %v1696_v4 = vadd.f32 %v1680_v11, %v1664_v25 }
 0xc89   : > { %1712 = vst [vmem:[%s2871_s25 + $0x20] sm:$0xff] %v1696_v4 }
 0xc8c   : > { %v1632_v63 = vpop.f32.mrf.mxu3 }
 0xc8d   : > { %v1665_v56 = vmul.f32 0.989901, %v1632_v63 }
 0xc8f   : > { %v1697_v18 = vadd.f32 %v1681_v14, %v1665_v56 }
 0xc91   : > { %1713 = vst [vmem:[%s2871_s25 + $0x28] sm:$0xff] %v1697_v18 }
 0xc94   : > { %v1635_v39 = vpop.f32.mrf.mxu3 }
 0xc95   : > { %v1666_v21 = vmul.f32 0.989901, %v1635_v39 }
 0xc97   : > { %v1698_v60 = vadd.f32 %v1682_v33, %v1666_v21 }
 0xc99   : > { %1714 = vst [vmem:[%s2871_s25 + $0x30] sm:$0xff] %v1698_v60 }
 0xc9c   : > { %v1637_v23 = vpop.f32.mrf.mxu3 }
 0xc9d   : > { %v1667_v53 = vmul.f32 0.989901, %v1637_v23 }
 0xc9f   : > { %v1699_v41 = vadd.f32 %v1683_v34, %v1667_v53 }
 0xca1   : > { %1715 = vst [vmem:[%s2871_s25 + $0x38] sm:$0xff] %v1699_v41 }
 0xca4   : > { %v1640_v29 = vpop.f32.mrf.mxu3 }
 0xca5   : > { %v1668_v16 = vmul.f32 0.989901, %v1640_v29 }
 0xca7   : > { %v1700_v9 = vadd.f32 %v1684_v0, %v1668_v16 }
 0xca9   : > { %1716 = vst [vmem:[%s2871_s25 + $0x40] sm:$0xff] %v1700_v9 }
 0xcac   : > { %v1642_v1 = vpop.f32.mrf.mxu3 }
 0xcad   : > { %v1669_v44 = vmul.f32 0.989901, %v1642_v1 }
 0xcaf   : > { %v1701_v36 = vadd.f32 %v1685_v32, %v1669_v44 }
 0xcb1   : > { %1717 = vst [vmem:[%s2871_s25 + $0x48] sm:$0xff] %v1701_v36 }
 0xcb4   : > { %v1645_v55 = vpop.f32.mrf.mxu3 }
 0xcb5   : > { %v1670_v2 = vmul.f32 0.989901, %v1645_v55 }
 0xcb7   : > { %v1702_v28 = vadd.f32 %v1686_v27, %v1670_v2 }
 0xcb9   : > { %1718 = vst [vmem:[%s2871_s25 + $0x50] sm:$0xff] %v1702_v28 }
 0xcbc   : > { %v1647_v26 = vpop.f32.mrf.mxu3 }
 0xcbd   : > { %v1671_v24 = vmul.f32 0.989901, %v1647_v26 }
 0xcbf   : > { %v1703_v52 = vadd.f32 %v1687_v49, %v1671_v24 }
 0xcc1   : > { %1719 = vst [vmem:[%s2871_s25 + $0x58] sm:$0xff] %v1703_v52 }
 0xcc4   : > { %v1650_v50 = vpop.f32.mrf.mxu3 }
 0xcc5   : > { %v1672_v45 = vmul.f32 0.989901, %v1650_v50 }
 0xcc7   : > { %v1704_v47 = vadd.f32 %v1688_v51, %v1672_v45 }
 0xcc9   : > { %1720 = vst [vmem:[%s2871_s25 + $0x60] sm:$0xff] %v1704_v47 }
 0xccc   : > { %v1652_v35 = vpop.f32.mrf.mxu3 }
 0xccd   : > { %v1673_v40 = vmul.f32 0.989901, %v1652_v35 }
 0xccf   : > { %v1705_v17 = vadd.f32 %v1689_v54, %v1673_v40 }
 0xcd1   : > { %1721 = vst [vmem:[%s2871_s25 + $0x68] sm:$0xff] %v1705_v17 }
 0xcd4   : > { %v1655_v15 = vpop.f32.mrf.mxu3 }
 0xcd5   : > { %v1674_v19 = vmul.f32 0.989901, %v1655_v15 }
 0xcd7   : > { %v1706_v43 = vadd.f32 %v1690_v38, %v1674_v19 }
 0xcd9   : > { %1722 = vst [vmem:[%s2871_s25 + $0x70] sm:$0xff] %v1706_v43 }
 0xcdc   : > { %v1657_v48 = vpop.f32.mrf.mxu3 }
 0xcdd   : > { %v1675_v31 = vmul.f32 0.989901, %v1657_v48 }
 0xcdf   : > { %v1707_v30 = vadd.f32 %v1691_v7, %v1675_v31 }
 0xce1   : > { %1723 = vst [vmem:[%s2871_s25 + $0x78] sm:$0xff] %v1707_v30 }
 0xce2 PF: > { %s16_s21 = sadd.s32 1, %s1991_s21  }
 0xce3   : > { %p13_p4 = scmp.ge.s32.totalorder %s16_s21, 6  }
 0xce5   :  { %15 = sbr.rel (!%p13_p4) target bundleno = 1 (0x1), region = 77 }

</bundles_post_ra>
